<compile_context>
chip_gen: v7x
topology: tpu7x:2x2x1
jax: 0.10.0
libtpu: 0.0.40
codegen_flags: <defaults>
</compile_context>

<pallas_src>
import functools

import numpy as np
import jax
import jax.numpy as jnp
from jax import lax
from jax.experimental import pallas as pl
from jax.experimental.pallas import tpu as pltpu


def _pair(v):
    if isinstance(v, (tuple, list)):
        return int(v[0]), int(v[1])
    return int(v), int(v)


def _rup(a, m):
    return -(-a // m) * m


def _phase_taps(K, s, p):
    """Per output phase r in [0, s): list of (k, d) taps.

    ConvTranspose output o (= q*s + r) receives sum_k x[q + d] * wflip[k] over k in [0, K)
    with (r + k - (K-1-p)) % s == 0, d = (r + k - (K-1-p)) // s, wflip[k] = w[K-1-k].
    Out-of-range x reads contribute 0 (handled by a small edge pad of the undilated input).
    """
    pe = K - 1 - p
    taps = []
    for r in range(s):
        k0 = (pe - r) % s
        taps.append([(k, (r + k - pe) // s) for k in range(k0, K, s)])
    return taps


def _make_kernel(s_h, s_w, taps_h, taps_w, Lh, Lw, dws, H_CHUNK, Wq, C_TILE):
    dw_slot = {d: j for j, d in enumerate(dws)}

    def kernel(x_ref, w_ref, b_ref, o_ref, xcol_ref):
        # x_ref   : (H_WIN, Wpad, C_TILE)          input row-window, C on lanes        [VMEM]
        # w_ref   : (KH, KW, C_TILE)               flipped depthwise filters (f32)     [VMEM]
        # b_ref   : (1, C_TILE)                    bias (f32)                          [VMEM]
        # o_ref   : (s_h*s_w, H_CHUNK, Wq, C_TILE) phase-major output chunk            [VMEM]
        # xcol_ref: (n_dw, H_WIN, Wq, C_TILE) f32  hoisted per-column-offset windows   [VMEM scratch]
        bt = b_ref[...]                                         # (1, C_TILE) f32

        # Hoist: one sublane-shifted (and f32-cast) window per distinct column offset dw,
        # reused across all kh taps and all s_h*s_w output phases.
        for d, j in dw_slot.items():
            co = d + Lw
            xcol_ref[j] = x_ref[:, co:co + Wq, :].astype(jnp.float32)

        for rh in range(s_h):                   # static, unrolled phases / taps
            for rw in range(s_w):
                acc = None
                for kh, dh in taps_h[rh]:
                    ro = dh + Lh                # leading-dim (cheap) row offset within the window
                    for kw, dw in taps_w[rw]:
                        wv = w_ref[kh, kw:kw + 1, :]            # (1, C_TILE) lane vector
                        t = xcol_ref[dw_slot[dw], ro:ro + H_CHUNK] * wv
                        acc = t if acc is None else acc + t
                if acc is None:                 # phase with no taps (stride > kernel)
                    res = jnp.broadcast_to(bt, (H_CHUNK, Wq, C_TILE))
                else:
                    res = acc + bt
                o_ref[rh * s_w + rw] = res.astype(o_ref.dtype)

    return kernel


def chanelwise_deconv(x, weight, bias, *, stride, padding, output_padding):
    """nn.ConvTranspose2d(C, C, k, stride, padding, groups=C, output_padding) forward."""
    N, C, H, W = x.shape
    KH, KW = int(weight.shape[2]), int(weight.shape[3])
    sh, sw = _pair(stride)
    ph, pw = _pair(padding)
    oph, opw = _pair(output_padding)

    H_out = (H - 1) * sh - 2 * ph + KH + oph
    W_out = (W - 1) * sw - 2 * pw + KW + opw

    taps_h = _phase_taps(KH, sh, ph)
    taps_w = _phase_taps(KW, sw, pw)
    dh_all = [d for tr in taps_h for _, d in tr] or [0]
    dw_all = [d for tr in taps_w for _, d in tr] or [0]
    Lh, Lw = max(0, -min(dh_all)), max(0, -min(dw_all))
    dh_max, dw_max = max(dh_all), max(dw_all)
    dws = sorted({d for tr in taps_w for _, d in tr}) or [0]
    n_dw = len(dws)
    halo_h = dh_max + Lh                        # extra input rows a chunk needs beyond H_CHUNK

    Hq = -(-H_out // sh)                        # per-phase output extents
    Wq = -(-W_out // sw)

    # Channel tiling: keep true C on lanes when C <= 128 (no 128-lane zero pad in HBM);
    # only pad to a multiple of 128 for wide channel counts.
    if C <= 128:
        Cp, C_TILE = C, C
    else:
        Cp, C_TILE = _rup(C, 128), 128
    n_ct = Cp // C_TILE

    # ---- generation-aware VMEM budget & tile sizing ----
    try:
        vmem_cap = int(pltpu.get_tpu_info().vmem_capacity_bytes)
    except Exception:
        vmem_cap = 64 << 20                     # conservative fallback (v7x per-core VMEM)
    vmem_budget = max(32 << 20, min(vmem_cap - (8 << 20), 112 << 20))

    in_isz = jnp.dtype(x.dtype).itemsize
    out_isz = in_isz
    pack_in = max(8, 32 // in_isz)              # sublane packing (8 f32 / 16 bf16 / 32 int8)
    pack_out = max(8, 32 // out_isz)
    lane = 128

    Rw = max(0, Wq + dw_max - W)                # small right-edge pad of the undilated input
    Wpad = Lw + W + Rw

    # Approximate per-output-row VMEM footprints (lane dim padded to 128 in VMEM).
    row_in = _rup(Wpad, pack_in) * lane * in_isz
    row_out = sh * sw * _rup(Wq, pack_out) * lane * out_isz
    row_col = n_dw * _rup(Wq, 8) * lane * 4                     # hoisted f32 column windows
    row_tmp = 2 * _rup(Wq, 8) * lane * 4                        # accumulator / result temps
    fixed = (2 * (KH * _rup(KW, 8) + _rup(1, 8)) * lane * 4     # weights + bias (double-buffered)
             + 2 * halo_h * row_in + halo_h * row_col + (2 << 20))
    per_row = 2 * row_in + 2 * row_out + row_col + row_tmp      # inputs/outputs double-buffered

    out_target = min(4 << 20, max(512 << 10, vmem_budget // 24))
    H_CHUNK = int(max(1, min(Hq,
                             (vmem_budget - fixed) // per_row,
                             max(1, out_target // row_out))))
    Hq_pad = _rup(Hq, H_CHUNK)
    n_hc = Hq_pad // H_CHUNK
    H_WIN = H_CHUNK + halo_h

    Rh = max(0, Hq_pad + dh_max - H)            # bottom-edge pad so every window is in range
    Hpad = Lh + H + Rh

    # ---- layout glue (HBM): NCHW -> NHWC, small edge pad, per-chunk row windows with
    # duplicated halo rows so every grid step is a plain blocked tile (VMEM = O(H_CHUNK)). ----
    xt = jnp.transpose(x, (0, 2, 3, 1))
    xt = jnp.pad(xt, ((0, 0), (Lh, Rh), (Lw, Rw), (0, Cp - C)))
    idx = (np.arange(n_hc, dtype=np.int32)[:, None] * H_CHUNK
           + np.arange(H_WIN, dtype=np.int32)[None, :])
    xwin = xt[:, idx, :, :]                     # (N, n_hc, H_WIN, Wpad, Cp)

    wflip = jnp.transpose(weight[:, 0, ::-1, ::-1], (1, 2, 0)).astype(jnp.float32)
    wflip = jnp.pad(wflip, ((0, 0), (0, 0), (0, Cp - C)))       # (KH, KW, Cp)
    bias_f = jnp.pad(bias.astype(jnp.float32), (0, Cp - C)).reshape(1, Cp)

    kernel = _make_kernel(sh, sw, taps_h, taps_w, Lh, Lw, dws, H_CHUNK, Wq, C_TILE)

    est = fixed + per_row * H_CHUNK
    vmem_limit = int(min(vmem_budget, max(32 << 20, 2 * est)))

    out5 = pl.pallas_call(
        kernel,
        out_shape=jax.ShapeDtypeStruct((N, sh * sw, Hq_pad, Wq, Cp), x.dtype),
        grid=(N, n_ct, n_hc),
        in_specs=[
            pl.BlockSpec((None, None, H_WIN, Wpad, C_TILE),
                         lambda n, ct, h: (n, h, 0, 0, ct)),
            pl.BlockSpec((KH, KW, C_TILE), lambda n, ct, h: (0, 0, ct)),
            pl.BlockSpec((1, C_TILE), lambda n, ct, h: (0, ct)),
        ],
        out_specs=pl.BlockSpec((None, sh * sw, H_CHUNK, Wq, C_TILE),
                               lambda n, ct, h: (n, 0, h, 0, ct)),
        scratch_shapes=[pltpu.VMEM((n_dw, H_WIN, Wq, C_TILE), jnp.float32)],
        compiler_params=pltpu.CompilerParams(
            dimension_semantics=("parallel", "parallel", "parallel"),
            vmem_limit_bytes=vmem_limit,
        ),
    )(xwin, wflip, bias_f)

    # phase-major (N, sh, sw, Hq_pad, Wq, Cp) -> NCHW; phase interleave is folded into this
    # single transpose pass; crop the H/W/C pads.
    # TODO(synk): if the surrounding graph can stay NHWC, this pass and the input transpose drop.
    out = out5.reshape(N, sh, sw, Hq_pad, Wq, Cp)
    out = jnp.transpose(out, (0, 5, 3, 1, 4, 2))        # (N, Cp, Hq_pad, sh, Wq, sw)
    out = out.reshape(N, Cp, Hq_pad * sh, Wq * sw)
    return out[:, :C, :H_out, :W_out]


if __name__ == "__main__":
    # small shapes consistent with the module: upsample-by-2 depthwise deconv
    N, C, H, W = 2, 4, 16, 16
    KH = KW = 3
    stride, padding, output_padding = 2, 1, 1

    key = jax.random.PRNGKey(0)
    k1, k2, k3 = jax.random.split(key, 3)
    x = jax.random.normal(k1, (N, C, H, W), dtype=jnp.float32)
    bound = 1.0 / (KH * KW) ** 0.5
    weight = jax.random.uniform(k2, (C, 1, KH, KW), jnp.float32, -bound, bound)
    bias = jax.random.uniform(k3, (C,), jnp.float32, -bound, bound)

    fn = jax.jit(functools.partial(chanelwise_deconv, stride=stride, padding=padding,
                                   output_padding=output_padding))
    y = jax.block_until_ready(fn(x, weight, bias))

    # pure-JAX reference: ConvTranspose2d == dilated-input conv with flipped kernel
    wflip = weight[:, :, ::-1, ::-1]
    ref = lax.conv_general_dilated(
        x, wflip,
        window_strides=(1, 1),
        padding=[(KH - 1 - padding, KH - 1 - padding + output_padding),
                 (KW - 1 - padding, KW - 1 - padding + output_padding)],
        lhs_dilation=(stride, stride),
        dimension_numbers=("NCHW", "OIHW", "NCHW"),
        feature_group_count=C,
    ) + bias[None, :, None, None]

    assert y.shape == ref.shape == (N, C, (H - 1) * stride - 2 * padding + KH + output_padding,
                                    (W - 1) * stride - 2 * padding + KW + output_padding), \
        (y.shape, ref.shape)
    assert jnp.allclose(y, ref, atol=1e-4, rtol=1e-4), float(jnp.max(jnp.abs(y - ref)))
    print("KERNEL_OK")
</pallas_src>

<mosaic_0001>
module attributes {stable_mosaic.version = 11 : i64} {
  func.func @kernel(%arg0: i32, %arg1: i32, %arg2: i32, %arg3: memref<1x1x17x17x4xf32, #tpu.memory_space<vmem>>, %arg4: memref<3x3x4xf32, #tpu.memory_space<vmem>>, %arg5: memref<1x4xf32, #tpu.memory_space<vmem>>, %arg6: memref<1x4x16x16x4xf32, #tpu.memory_space<vmem>>, %arg7: memref<2x17x16x4xf32, #tpu.memory_space<vmem>>) attributes {dimension_semantics = [#tpu.dimension_semantics<parallel>, #tpu.dimension_semantics<parallel>, #tpu.dimension_semantics<parallel>], iteration_bounds = array<i64: 2, 1, 1>, scalar_prefetch = 0 : i64, scratch_operands = 1 : i64, tpu.core_type = #tpu.core_type<tc>, window_params = [{transform_indices = @transform_0, window_bounds = array<i64: 1, 1, 17, 17, 4>}, {transform_indices = @transform_1, window_bounds = array<i64: 3, 3, 4>}, {transform_indices = @transform_2, window_bounds = array<i64: 1, 4>}, {transform_indices = @transform_3, window_bounds = array<i64: 1, 4, 16, 16, 4>}]} {
    %c0 = arith.constant 0 : index
    %c0_0 = arith.constant 0 : index
    %0 = vector.load %arg5[%c0, %c0_0] : memref<1x4xf32, #tpu.memory_space<vmem>>, vector<1x4xf32>
    %c0_1 = arith.constant 0 : index
    %c0_2 = arith.constant 0 : index
    %c0_3 = arith.constant 0 : index
    %c0_4 = arith.constant 0 : index
    %c0_5 = arith.constant 0 : index
    %1 = vector.load %arg3[%c0_1, %c0_2, %c0_3, %c0_4, %c0_5] : memref<1x1x17x17x4xf32, #tpu.memory_space<vmem>>, vector<1x1x17x16x4xf32>
    %2 = vector.shape_cast %1 : vector<1x1x17x16x4xf32> to vector<17x16x4xf32>
    %c0_6 = arith.constant 0 : index
    %c0_7 = arith.constant 0 : index
    %c0_8 = arith.constant 0 : index
    %c0_9 = arith.constant 0 : index
    %3 = vector.load %arg7[%c0_6, %c0_7, %c0_8, %c0_9] : memref<2x17x16x4xf32, #tpu.memory_space<vmem>>, vector<1x17x16x4xf32>
    %4 = vector.shape_cast %3 : vector<1x17x16x4xf32> to vector<17x16x4xf32>
    %5 = vector.shape_cast %2 : vector<17x16x4xf32> to vector<1x17x16x4xf32>
    tpu.vector_store %arg7[%c0_6, %c0_7, %c0_8, %c0_9], %5 {strides = array<i32>} : memref<2x17x16x4xf32, #tpu.memory_space<vmem>>, vector<1x17x16x4xf32>,
    %c0_10 = arith.constant 0 : index
    %c0_11 = arith.constant 0 : index
    %c0_12 = arith.constant 0 : index
    %c1 = arith.constant 1 : index
    %c0_13 = arith.constant 0 : index
    %6 = vector.load %arg3[%c0_10, %c0_11, %c0_12, %c1, %c0_13] : memref<1x1x17x17x4xf32, #tpu.memory_space<vmem>>, vector<1x1x17x16x4xf32>
    %7 = vector.shape_cast %6 : vector<1x1x17x16x4xf32> to vector<17x16x4xf32>
    %c1_14 = arith.constant 1 : index
    %c0_15 = arith.constant 0 : index
    %c0_16 = arith.constant 0 : index
    %c0_17 = arith.constant 0 : index
    %8 = vector.load %arg7[%c1_14, %c0_15, %c0_16, %c0_17] : memref<2x17x16x4xf32, #tpu.memory_space<vmem>>, vector<1x17x16x4xf32>
    %9 = vector.shape_cast %8 : vector<1x17x16x4xf32> to vector<17x16x4xf32>
    %10 = vector.shape_cast %7 : vector<17x16x4xf32> to vector<1x17x16x4xf32>
    tpu.vector_store %arg7[%c1_14, %c0_15, %c0_16, %c0_17], %10 {strides = array<i32>} : memref<2x17x16x4xf32, #tpu.memory_space<vmem>>, vector<1x17x16x4xf32>,
    %c1_18 = arith.constant 1 : index
    %c1_19 = arith.constant 1 : index
    %c0_20 = arith.constant 0 : index
    %11 = vector.load %arg4[%c1_18, %c1_19, %c0_20] : memref<3x3x4xf32, #tpu.memory_space<vmem>>, vector<1x1x4xf32>
    %12 = vector.shape_cast %11 : vector<1x1x4xf32> to vector<1x4xf32>
    %c0_21 = arith.constant 0 : index
    %c0_22 = arith.constant 0 : index
    %c0_23 = arith.constant 0 : index
    %c0_24 = arith.constant 0 : index
    %13 = vector.load %arg7[%c0_21, %c0_22, %c0_23, %c0_24] : memref<2x17x16x4xf32, #tpu.memory_space<vmem>>, vector<1x16x16x4xf32>
    %14 = vector.shape_cast %13 : vector<1x16x16x4xf32> to vector<16x16x4xf32>
    %15 = vector.shape_cast %12 : vector<1x4xf32> to vector<1x1x4xf32>
    %16 = vector.broadcast %15 : vector<1x1x4xf32> to vector<16x16x4xf32>
    %17 = arith.mulf %14, %16 : vector<16x16x4xf32>
    %18 = vector.shape_cast %0 : vector<1x4xf32> to vector<1x1x4xf32>
    %19 = vector.broadcast %18 : vector<1x1x4xf32> to vector<16x16x4xf32>
    %20 = arith.addf %17, %19 : vector<16x16x4xf32>
    %c0_25 = arith.constant 0 : index
    %c0_26 = arith.constant 0 : index
    %c0_27 = arith.constant 0 : index
    %c0_28 = arith.constant 0 : index
    %c0_29 = arith.constant 0 : index
    %21 = vector.load %arg6[%c0_25, %c0_26, %c0_27, %c0_28, %c0_29] : memref<1x4x16x16x4xf32, #tpu.memory_space<vmem>>, vector<1x1x16x16x4xf32>
    %22 = vector.shape_cast %21 : vector<1x1x16x16x4xf32> to vector<16x16x4xf32>
    %23 = vector.shape_cast %20 : vector<16x16x4xf32> to vector<1x1x16x16x4xf32>
    tpu.vector_store %arg6[%c0_25, %c0_26, %c0_27, %c0_28, %c0_29], %23 {strides = array<i32>} : memref<1x4x16x16x4xf32, #tpu.memory_space<vmem>>, vector<1x1x16x16x4xf32>,
    %c1_30 = arith.constant 1 : index
    %c0_31 = arith.constant 0 : index
    %c0_32 = arith.constant 0 : index
    %24 = vector.load %arg4[%c1_30, %c0_31, %c0_32] : memref<3x3x4xf32, #tpu.memory_space<vmem>>, vector<1x1x4xf32>
    %25 = vector.shape_cast %24 : vector<1x1x4xf32> to vector<1x4xf32>
    %c0_33 = arith.constant 0 : index
    %c0_34 = arith.constant 0 : index
    %c0_35 = arith.constant 0 : index
    %c0_36 = arith.constant 0 : index
    %26 = vector.load %arg7[%c0_33, %c0_34, %c0_35, %c0_36] : memref<2x17x16x4xf32, #tpu.memory_space<vmem>>, vector<1x16x16x4xf32>
    %27 = vector.shape_cast %26 : vector<1x16x16x4xf32> to vector<16x16x4xf32>
    %28 = vector.shape_cast %25 : vector<1x4xf32> to vector<1x1x4xf32>
    %29 = vector.broadcast %28 : vector<1x1x4xf32> to vector<16x16x4xf32>
    %30 = arith.mulf %27, %29 : vector<16x16x4xf32>
    %c1_37 = arith.constant 1 : index
    %c2 = arith.constant 2 : index
    %c0_38 = arith.constant 0 : index
    %31 = vector.load %arg4[%c1_37, %c2, %c0_38] : memref<3x3x4xf32, #tpu.memory_space<vmem>>, vector<1x1x4xf32>
    %32 = vector.shape_cast %31 : vector<1x1x4xf32> to vector<1x4xf32>
    %c1_39 = arith.constant 1 : index
    %c0_40 = arith.constant 0 : index
    %c0_41 = arith.constant 0 : index
    %c0_42 = arith.constant 0 : index
    %33 = vector.load %arg7[%c1_39, %c0_40, %c0_41, %c0_42] : memref<2x17x16x4xf32, #tpu.memory_space<vmem>>, vector<1x16x16x4xf32>
    %34 = vector.shape_cast %33 : vector<1x16x16x4xf32> to vector<16x16x4xf32>
    %35 = vector.shape_cast %32 : vector<1x4xf32> to vector<1x1x4xf32>
    %36 = vector.broadcast %35 : vector<1x1x4xf32> to vector<16x16x4xf32>
    %37 = arith.mulf %34, %36 : vector<16x16x4xf32>
    %38 = arith.addf %30, %37 : vector<16x16x4xf32>
    %39 = vector.shape_cast %0 : vector<1x4xf32> to vector<1x1x4xf32>
    %40 = vector.broadcast %39 : vector<1x1x4xf32> to vector<16x16x4xf32>
    %41 = arith.addf %38, %40 : vector<16x16x4xf32>
    %c0_43 = arith.constant 0 : index
    %c1_44 = arith.constant 1 : index
    %c0_45 = arith.constant 0 : index
    %c0_46 = arith.constant 0 : index
    %c0_47 = arith.constant 0 : index
    %42 = vector.load %arg6[%c0_43, %c1_44, %c0_45, %c0_46, %c0_47] : memref<1x4x16x16x4xf32, #tpu.memory_space<vmem>>, vector<1x1x16x16x4xf32>
    %43 = vector.shape_cast %42 : vector<1x1x16x16x4xf32> to vector<16x16x4xf32>
    %44 = vector.shape_cast %41 : vector<16x16x4xf32> to vector<1x1x16x16x4xf32>
    tpu.vector_store %arg6[%c0_43, %c1_44, %c0_45, %c0_46, %c0_47], %44 {strides = array<i32>} : memref<1x4x16x16x4xf32, #tpu.memory_space<vmem>>, vector<1x1x16x16x4xf32>,
    %c0_48 = arith.constant 0 : index
    %c1_49 = arith.constant 1 : index
    %c0_50 = arith.constant 0 : index
    %45 = vector.load %arg4[%c0_48, %c1_49, %c0_50] : memref<3x3x4xf32, #tpu.memory_space<vmem>>, vector<1x1x4xf32>
    %46 = vector.shape_cast %45 : vector<1x1x4xf32> to vector<1x4xf32>
    %c0_51 = arith.constant 0 : index
    %c0_52 = arith.constant 0 : index
    %c0_53 = arith.constant 0 : index
    %c0_54 = arith.constant 0 : index
    %47 = vector.load %arg7[%c0_51, %c0_52, %c0_53, %c0_54] : memref<2x17x16x4xf32, #tpu.memory_space<vmem>>, vector<1x16x16x4xf32>
    %48 = vector.shape_cast %47 : vector<1x16x16x4xf32> to vector<16x16x4xf32>
    %49 = vector.shape_cast %46 : vector<1x4xf32> to vector<1x1x4xf32>
    %50 = vector.broadcast %49 : vector<1x1x4xf32> to vector<16x16x4xf32>
    %51 = arith.mulf %48, %50 : vector<16x16x4xf32>
    %c2_55 = arith.constant 2 : index
    %c1_56 = arith.constant 1 : index
    %c0_57 = arith.constant 0 : index
    %52 = vector.load %arg4[%c2_55, %c1_56, %c0_57] : memref<3x3x4xf32, #tpu.memory_space<vmem>>, vector<1x1x4xf32>
    %53 = vector.shape_cast %52 : vector<1x1x4xf32> to vector<1x4xf32>
    %c0_58 = arith.constant 0 : index
    %c1_59 = arith.constant 1 : index
    %c0_60 = arith.constant 0 : index
    %c0_61 = arith.constant 0 : index
    %54 = vector.load %arg7[%c0_58, %c1_59, %c0_60, %c0_61] : memref<2x17x16x4xf32, #tpu.memory_space<vmem>>, vector<1x16x16x4xf32>
    %55 = vector.shape_cast %54 : vector<1x16x16x4xf32> to vector<16x16x4xf32>
    %56 = vector.shape_cast %53 : vector<1x4xf32> to vector<1x1x4xf32>
    %57 = vector.broadcast %56 : vector<1x1x4xf32> to vector<16x16x4xf32>
    %58 = arith.mulf %55, %57 : vector<16x16x4xf32>
    %59 = arith.addf %51, %58 : vector<16x16x4xf32>
    %60 = vector.shape_cast %0 : vector<1x4xf32> to vector<1x1x4xf32>
    %61 = vector.broadcast %60 : vector<1x1x4xf32> to vector<16x16x4xf32>
    %62 = arith.addf %59, %61 : vector<16x16x4xf32>
    %c0_62 = arith.constant 0 : index
    %c2_63 = arith.constant 2 : index
    %c0_64 = arith.constant 0 : index
    %c0_65 = arith.constant 0 : index
    %c0_66 = arith.constant 0 : index
    %63 = vector.load %arg6[%c0_62, %c2_63, %c0_64, %c0_65, %c0_66] : memref<1x4x16x16x4xf32, #tpu.memory_space<vmem>>, vector<1x1x16x16x4xf32>
    %64 = vector.shape_cast %63 : vector<1x1x16x16x4xf32> to vector<16x16x4xf32>
    %65 = vector.shape_cast %62 : vector<16x16x4xf32> to vector<1x1x16x16x4xf32>
    tpu.vector_store %arg6[%c0_62, %c2_63, %c0_64, %c0_65, %c0_66], %65 {strides = array<i32>} : memref<1x4x16x16x4xf32, #tpu.memory_space<vmem>>, vector<1x1x16x16x4xf32>,
    %c0_67 = arith.constant 0 : index
    %c0_68 = arith.constant 0 : index
    %c0_69 = arith.constant 0 : index
    %66 = vector.load %arg4[%c0_67, %c0_68, %c0_69] : memref<3x3x4xf32, #tpu.memory_space<vmem>>, vector<1x1x4xf32>
    %67 = vector.shape_cast %66 : vector<1x1x4xf32> to vector<1x4xf32>
    %c0_70 = arith.constant 0 : index
    %c0_71 = arith.constant 0 : index
    %c0_72 = arith.constant 0 : index
    %c0_73 = arith.constant 0 : index
    %68 = vector.load %arg7[%c0_70, %c0_71, %c0_72, %c0_73] : memref<2x17x16x4xf32, #tpu.memory_space<vmem>>, vector<1x16x16x4xf32>
    %69 = vector.shape_cast %68 : vector<1x16x16x4xf32> to vector<16x16x4xf32>
    %70 = vector.shape_cast %67 : vector<1x4xf32> to vector<1x1x4xf32>
    %71 = vector.broadcast %70 : vector<1x1x4xf32> to vector<16x16x4xf32>
    %72 = arith.mulf %69, %71 : vector<16x16x4xf32>
    %c0_74 = arith.constant 0 : index
    %c2_75 = arith.constant 2 : index
    %c0_76 = arith.constant 0 : index
    %73 = vector.load %arg4[%c0_74, %c2_75, %c0_76] : memref<3x3x4xf32, #tpu.memory_space<vmem>>, vector<1x1x4xf32>
    %74 = vector.shape_cast %73 : vector<1x1x4xf32> to vector<1x4xf32>
    %c1_77 = arith.constant 1 : index
    %c0_78 = arith.constant 0 : index
    %c0_79 = arith.constant 0 : index
    %c0_80 = arith.constant 0 : index
    %75 = vector.load %arg7[%c1_77, %c0_78, %c0_79, %c0_80] : memref<2x17x16x4xf32, #tpu.memory_space<vmem>>, vector<1x16x16x4xf32>
    %76 = vector.shape_cast %75 : vector<1x16x16x4xf32> to vector<16x16x4xf32>
    %77 = vector.shape_cast %74 : vector<1x4xf32> to vector<1x1x4xf32>
    %78 = vector.broadcast %77 : vector<1x1x4xf32> to vector<16x16x4xf32>
    %79 = arith.mulf %76, %78 : vector<16x16x4xf32>
    %80 = arith.addf %72, %79 : vector<16x16x4xf32>
    %c2_81 = arith.constant 2 : index
    %c0_82 = arith.constant 0 : index
    %c0_83 = arith.constant 0 : index
    %81 = vector.load %arg4[%c2_81, %c0_82, %c0_83] : memref<3x3x4xf32, #tpu.memory_space<vmem>>, vector<1x1x4xf32>
    %82 = vector.shape_cast %81 : vector<1x1x4xf32> to vector<1x4xf32>
    %c0_84 = arith.constant 0 : index
    %c1_85 = arith.constant 1 : index
    %c0_86 = arith.constant 0 : index
    %c0_87 = arith.constant 0 : index
    %83 = vector.load %arg7[%c0_84, %c1_85, %c0_86, %c0_87] : memref<2x17x16x4xf32, #tpu.memory_space<vmem>>, vector<1x16x16x4xf32>
    %84 = vector.shape_cast %83 : vector<1x16x16x4xf32> to vector<16x16x4xf32>
    %85 = vector.shape_cast %82 : vector<1x4xf32> to vector<1x1x4xf32>
    %86 = vector.broadcast %85 : vector<1x1x4xf32> to vector<16x16x4xf32>
    %87 = arith.mulf %84, %86 : vector<16x16x4xf32>
    %88 = arith.addf %80, %87 : vector<16x16x4xf32>
    %c2_88 = arith.constant 2 : index
    %c2_89 = arith.constant 2 : index
    %c0_90 = arith.constant 0 : index
    %89 = vector.load %arg4[%c2_88, %c2_89, %c0_90] : memref<3x3x4xf32, #tpu.memory_space<vmem>>, vector<1x1x4xf32>
    %90 = vector.shape_cast %89 : vector<1x1x4xf32> to vector<1x4xf32>
    %c1_91 = arith.constant 1 : index
    %c1_92 = arith.constant 1 : index
    %c0_93 = arith.constant 0 : index
    %c0_94 = arith.constant 0 : index
    %91 = vector.load %arg7[%c1_91, %c1_92, %c0_93, %c0_94] : memref<2x17x16x4xf32, #tpu.memory_space<vmem>>, vector<1x16x16x4xf32>
    %92 = vector.shape_cast %91 : vector<1x16x16x4xf32> to vector<16x16x4xf32>
    %93 = vector.shape_cast %90 : vector<1x4xf32> to vector<1x1x4xf32>
    %94 = vector.broadcast %93 : vector<1x1x4xf32> to vector<16x16x4xf32>
    %95 = arith.mulf %92, %94 : vector<16x16x4xf32>
    %96 = arith.addf %88, %95 : vector<16x16x4xf32>
    %97 = vector.shape_cast %0 : vector<1x4xf32> to vector<1x1x4xf32>
    %98 = vector.broadcast %97 : vector<1x1x4xf32> to vector<16x16x4xf32>
    %99 = arith.addf %96, %98 : vector<16x16x4xf32>
    %c0_95 = arith.constant 0 : index
    %c3 = arith.constant 3 : index
    %c0_96 = arith.constant 0 : index
    %c0_97 = arith.constant 0 : index
    %c0_98 = arith.constant 0 : index
    %100 = vector.load %arg6[%c0_95, %c3, %c0_96, %c0_97, %c0_98] : memref<1x4x16x16x4xf32, #tpu.memory_space<vmem>>, vector<1x1x16x16x4xf32>
    %101 = vector.shape_cast %100 : vector<1x1x16x16x4xf32> to vector<16x16x4xf32>
    %102 = vector.shape_cast %99 : vector<16x16x4xf32> to vector<1x1x16x16x4xf32>
    tpu.vector_store %arg6[%c0_95, %c3, %c0_96, %c0_97, %c0_98], %102 {strides = array<i32>} : memref<1x4x16x16x4xf32, #tpu.memory_space<vmem>>, vector<1x1x16x16x4xf32>,
    return
  }
  func.func @transform_0(%arg0: i32, %arg1: i32, %arg2: i32) -> (i32, i32, i32, i32, i32) {
    %c0_i32 = arith.constant 0 : i32
    %c0_i32_0 = arith.constant 0 : i32
    %c0_i32_1 = arith.constant 0 : i32
    return %arg0, %arg2, %c0_i32, %c0_i32_0, %arg1 : i32, i32, i32, i32, i32
  }
  func.func @transform_1(%arg0: i32, %arg1: i32, %arg2: i32) -> (i32, i32, i32) {
    %c0_i32 = arith.constant 0 : i32
    %c0_i32_0 = arith.constant 0 : i32
    %c0_i32_1 = arith.constant 0 : i32
    return %c0_i32, %c0_i32_0, %arg1 : i32, i32, i32
  }
  func.func @transform_2(%arg0: i32, %arg1: i32, %arg2: i32) -> (i32, i32) {
    %c0_i32 = arith.constant 0 : i32
    %c0_i32_0 = arith.constant 0 : i32
    return %c0_i32, %arg1 : i32, i32
  }
  func.func @transform_3(%arg0: i32, %arg1: i32, %arg2: i32) -> (i32, i32, i32, i32, i32) {
    %c0_i32 = arith.constant 0 : i32
    %c0_i32_0 = arith.constant 0 : i32
    %c0_i32_1 = arith.constant 0 : i32
    return %arg0, %c0_i32, %arg2, %c0_i32_0, %arg1 : i32, i32, i32, i32, i32
  }
}

</mosaic_0001>

<bundles_post_ra>
// kernel: chanelwise_deconv.1
= control target key start
LH: loop header
LB: loop body
LE: loop exit
PB: predicated region body
PF: predicated region fallthrough
CT: control target
= control target key end

     0   :  { %s1790_s12 = smov 0   ;;  %s1792_s13 = smov 0   ;;  %s2960_s0 = inlined_call_operand.vmem [shape: f32[2,1,17,17,4], index: 0, kind: input, shape index: {}]   ;;  %s2961_s1 = inlined_call_operand.vmem [shape: f32[3,3,4], index: 1, kind: input, shape index: {}]   ;;  %s2962_s2 = inlined_call_operand.vmem [shape: f32[1,4], index: 2, kind: input, shape index: {}]   ;;  %s2963_s3 = inlined_call_operand.vmem [shape: f32[2,4,16,16,4], index: 3, kind: output, shape index: {}]  }
   0x1   :  { %s1794_s14 = smov 0  }
   0x2 LB: > { %s32_s15 = sadd.s32 1, %s1764_s13  ;;  %p1601_p0 = scmp.ge.s32.totalorder %s1768_s14, 1  ;;  %s1768_s14 = sphi %s1794_s14, %s13_s14   ;;  %s1764_s13 = sphi %s1792_s13, %s2981_s13   ;;  %s1760_s12 = sphi %s1790_s12, %s2980_s12  }
   0x3   : > { %p34_p1 = scmp.ge.s32.totalorder %s32_s15, 2  ;;  %p188_p2 = scmp.lt.s32.totalorder %s1768_s14, 3 }
   0x5   : > { %s2983_s15 = smov (%p34_p1, %s32_s15), 0  ;;  %p189_p3 = pnand %p1601_p0, %p188_p2 }
   0x7   : > { %192 = sbr.rel (%p189_p3) target bundleno = 211 (0xd3), region = 32 }
   0xe   : > { %p234_p4 = scmp.lt.s32.totalorder %s1760_s12, 1  ;;  %vm302_vm0 = vcmask 31744   ;;  %v1930_v57 = vld [vmem:[%s2961_s1 + $0x5] ss:$0 sm:$0xff]  ;;  %v1935_v58 = vld [vmem:[%s2961_s1 + $0x4] ss:$0 sm:$0xff] }
   0xf   : > { %v1940_v59 = vld [vmem:[%s2961_s1 + $0x1] ss:$0 sm:$0xff] }
  0x10   : > { %s2985_s12 = smov (!%p234_p4, %s1760_s12), 1 }
  0x11   : > { %s1720_s16 = smul.u32 408, %s2985_s12  ;;  %s1719_s28 = sshll.u32 %s2985_s12, 10 }
  0x12   : > { %s1989_s4 = scalar_lea.vmem %s2963_s3, %s1719_s28 }
  0x13   : > { %s1814_s19 = scalar_lea.vmem %s2960_s0, %s1720_s16 }
  0x14   : > { %v268_v0 = vld [vmem:[%s1814_s19] sm:$0xff]  ;;  %v269_v1 = vld [vmem:[%s1814_s19 + $0x8] sm:$0xff]  ;;  %v270_v2 = vld [vmem:[%s1814_s19 + $0x18] sm:$0xff] }
  0x15   : > { %303 = vst.msk [vmem:[#allocation2] sm:$0xff] %vm302_vm0, %v268_v0  ;;  %304 = vst.msk [vmem:[#allocation2 + $0x8] sm:$0xff] %vm302_vm0, %v269_v1  ;;  %v271_v3 = vld [vmem:[%s1814_s19 + $0x20] sm:$0xff]  ;;  %v272_v4 = vld [vmem:[%s1814_s19 + $0x30] sm:$0xff] }
  0x16   : > { %305 = vst.msk [vmem:[#allocation2 + $0x10] sm:$0xff] %vm302_vm0, %v270_v2  ;;  %v273_v5 = vld [vmem:[%s1814_s19 + $0x38] sm:$0xff]  ;;  %306 = vst.msk [vmem:[#allocation2 + $0x18] sm:$0xff] %vm302_vm0, %v271_v3  ;;  %v274_v6 = vld [vmem:[%s1814_s19 + $0x48] sm:$0xff] }
  0x17   : > { %307 = vst.msk [vmem:[#allocation2 + $0x20] sm:$0xff] %vm302_vm0, %v272_v4  ;;  %308 = vst.msk [vmem:[#allocation2 + $0x28] sm:$0xff] %vm302_vm0, %v273_v5  ;;  %v275_v7 = vld [vmem:[%s1814_s19 + $0x50] sm:$0xff]  ;;  %v276_v8 = vld [vmem:[%s1814_s19 + $0x60] sm:$0xff] }
  0x18   : > { %309 = vst.msk [vmem:[#allocation2 + $0x30] sm:$0xff] %vm302_vm0, %v274_v6  ;;  %310 = vst.msk [vmem:[#allocation2 + $0x38] sm:$0xff] %vm302_vm0, %v275_v7  ;;  %v277_v9 = vld [vmem:[%s1814_s19 + $0x68] sm:$0xff]  ;;  %v278_v10 = vld [vmem:[%s1814_s19 + $0x78] sm:$0xff] }
  0x19   : > { %311 = vst.msk [vmem:[#allocation2 + $0x40] sm:$0xff] %vm302_vm0, %v276_v8  ;;  %v279_v11 = vld [vmem:[%s1814_s19 + $0x80] sm:$0xff]  ;;  %312 = vst.msk [vmem:[#allocation2 + $0x48] sm:$0xff] %vm302_vm0, %v277_v9  ;;  %v280_v12 = vld [vmem:[%s1814_s19 + $0x90] sm:$0xff] }
  0x1a   : > { %313 = vst.msk [vmem:[#allocation2 + $0x50] sm:$0xff] %vm302_vm0, %v278_v10  ;;  %314 = vst.msk [vmem:[#allocation2 + $0x58] sm:$0xff] %vm302_vm0, %v279_v11  ;;  %v281_v13 = vld [vmem:[%s1814_s19 + $0x98] sm:$0xff]  ;;  %v282_v14 = vld [vmem:[%s1814_s19 + $0xa8] sm:$0xff] }
  0x1b   : > { %315 = vst.msk [vmem:[#allocation2 + $0x60] sm:$0xff] %vm302_vm0, %v280_v12  ;;  %316 = vst.msk [vmem:[#allocation2 + $0x68] sm:$0xff] %vm302_vm0, %v281_v13  ;;  %v283_v15 = vld [vmem:[%s1814_s19 + $0xb0] sm:$0xff]  ;;  %v284_v16 = vld [vmem:[%s1814_s19 + $0xc0] sm:$0xff] }
  0x1c   : > { %317 = vst.msk [vmem:[#allocation2 + $0x70] sm:$0xff] %vm302_vm0, %v282_v14  ;;  %v285_v17 = vld [vmem:[%s1814_s19 + $0xc8] sm:$0xff]  ;;  %318 = vst.msk [vmem:[#allocation2 + $0x78] sm:$0xff] %vm302_vm0, %v283_v15  ;;  %v286_v18 = vld [vmem:[%s1814_s19 + $0xd8] sm:$0xff] }
  0x1d   : > { %319 = vst.msk [vmem:[#allocation2 + $0x80] sm:$0xff] %vm302_vm0, %v284_v16  ;;  %320 = vst.msk [vmem:[#allocation2 + $0x88] sm:$0xff] %vm302_vm0, %v285_v17  ;;  %v287_v19 = vld [vmem:[%s1814_s19 + $0xe0] sm:$0xff]  ;;  %v288_v20 = vld [vmem:[%s1814_s19 + $0xf0] sm:$0xff] }
  0x1e   : > { %321 = vst.msk [vmem:[#allocation2 + $0x90] sm:$0xff] %vm302_vm0, %v286_v18  ;;  %322 = vst.msk [vmem:[#allocation2 + $0x98] sm:$0xff] %vm302_vm0, %v287_v19  ;;  %v289_v21 = vld [vmem:[%s1814_s19 + $0xf8] sm:$0xff]  ;;  %v290_v22 = vld [vmem:[%s1814_s19 + $0x108] sm:$0xff] }
  0x1f   : > { %323 = vst.msk [vmem:[#allocation2 + $0xa0] sm:$0xff] %vm302_vm0, %v288_v20  ;;  %v291_v23 = vld [vmem:[%s1814_s19 + $0x110] sm:$0xff]  ;;  %324 = vst.msk [vmem:[#allocation2 + $0xa8] sm:$0xff] %vm302_vm0, %v289_v21  ;;  %v292_v24 = vld [vmem:[%s1814_s19 + $0x120] sm:$0xff] }
  0x20   : > { %325 = vst.msk [vmem:[#allocation2 + $0xb0] sm:$0xff] %vm302_vm0, %v290_v22  ;;  %326 = vst.msk [vmem:[#allocation2 + $0xb8] sm:$0xff] %vm302_vm0, %v291_v23  ;;  %v293_v25 = vld [vmem:[%s1814_s19 + $0x128] sm:$0xff]  ;;  %v294_v26 = vld [vmem:[%s1814_s19 + $0x138] sm:$0xff] }
  0x21   : > { %327 = vst.msk [vmem:[#allocation2 + $0xc0] sm:$0xff] %vm302_vm0, %v292_v24  ;;  %328 = vst.msk [vmem:[#allocation2 + $0xc8] sm:$0xff] %vm302_vm0, %v293_v25  ;;  %v295_v27 = vld [vmem:[%s1814_s19 + $0x140] sm:$0xff]  ;;  %v296_v28 = vld [vmem:[%s1814_s19 + $0x150] sm:$0xff] }
  0x22   : > { %329 = vst.msk [vmem:[#allocation2 + $0xd0] sm:$0xff] %vm302_vm0, %v294_v26  ;;  %v297_v29 = vld [vmem:[%s1814_s19 + $0x158] sm:$0xff]  ;;  %330 = vst.msk [vmem:[#allocation2 + $0xd8] sm:$0xff] %vm302_vm0, %v295_v27  ;;  %v298_v30 = vld [vmem:[%s1814_s19 + $0x168] sm:$0xff] }
  0x23   : > { %331 = vst.msk [vmem:[#allocation2 + $0xe0] sm:$0xff] %vm302_vm0, %v296_v28  ;;  %332 = vst.msk [vmem:[#allocation2 + $0xe8] sm:$0xff] %vm302_vm0, %v297_v29  ;;  %v299_v31 = vld [vmem:[%s1814_s19 + $0x170] sm:$0xff]  ;;  %v300_v32 = vld [vmem:[%s1814_s19 + $0x180] sm:$0xff] }
  0x24   : > { %333 = vst.msk [vmem:[#allocation2 + $0xf0] sm:$0xff] %vm302_vm0, %v298_v30  ;;  %334 = vst.msk [vmem:[#allocation2 + $0xf8] sm:$0xff] %vm302_vm0, %v299_v31  ;;  %v301_v33 = vld [vmem:[%s1814_s19 + $0x188] sm:$0xff]  ;;  %v339_v36 = vld [vmem:[%s1814_s19 + $0x19] sm:$0xff] }
  0x25   : > { %335 = vst.msk [vmem:[#allocation2 + $0x100] sm:$0xff] %vm302_vm0, %v300_v32  ;;  %v337_v34 = vld [vmem:[%s1814_s19 + $0x1] sm:$0xff]  ;;  %v338_v35 = vld [vmem:[%s1814_s19 + $0x9] sm:$0xff]  ;;  %336 = vst.msk [vmem:[#allocation2 + $0x108] sm:$0xff] %vm302_vm0, %v301_v33 }
  0x26   : > { %372 = vst.msk [vmem:[#allocation2 + $0x110] sm:$0xff] %vm302_vm0, %v337_v34  ;;  %373 = vst.msk [vmem:[#allocation2 + $0x118] sm:$0xff] %vm302_vm0, %v338_v35  ;;  %v340_v37 = vld [vmem:[%s1814_s19 + $0x21] sm:$0xff]  ;;  %v341_v38 = vld [vmem:[%s1814_s19 + $0x31] sm:$0xff] }
  0x27   : > { %374 = vst.msk [vmem:[#allocation2 + $0x120] sm:$0xff] %vm302_vm0, %v339_v36  ;;  %375 = vst.msk [vmem:[#allocation2 + $0x128] sm:$0xff] %vm302_vm0, %v340_v37  ;;  %v342_v39 = vld [vmem:[%s1814_s19 + $0x39] sm:$0xff]  ;;  %v343_v40 = vld [vmem:[%s1814_s19 + $0x49] sm:$0xff] }
  0x28   : > { %376 = vst.msk [vmem:[#allocation2 + $0x130] sm:$0xff] %vm302_vm0, %v341_v38  ;;  %v344_v41 = vld [vmem:[%s1814_s19 + $0x51] sm:$0xff]  ;;  %377 = vst.msk [vmem:[#allocation2 + $0x138] sm:$0xff] %vm302_vm0, %v342_v39  ;;  %v345_v42 = vld [vmem:[%s1814_s19 + $0x61] sm:$0xff] }
  0x29   : > { %378 = vst.msk [vmem:[#allocation2 + $0x140] sm:$0xff] %vm302_vm0, %v343_v40  ;;  %379 = vst.msk [vmem:[#allocation2 + $0x148] sm:$0xff] %vm302_vm0, %v344_v41  ;;  %v346_v43 = vld [vmem:[%s1814_s19 + $0x69] sm:$0xff]  ;;  %v347_v44 = vld [vmem:[%s1814_s19 + $0x79] sm:$0xff] }
  0x2a   : > { %380 = vst.msk [vmem:[#allocation2 + $0x150] sm:$0xff] %vm302_vm0, %v345_v42  ;;  %381 = vst.msk [vmem:[#allocation2 + $0x158] sm:$0xff] %vm302_vm0, %v346_v43  ;;  %v348_v45 = vld [vmem:[%s1814_s19 + $0x81] sm:$0xff]  ;;  %v349_v46 = vld [vmem:[%s1814_s19 + $0x91] sm:$0xff] }
  0x2b   : > { %382 = vst.msk [vmem:[#allocation2 + $0x160] sm:$0xff] %vm302_vm0, %v347_v44  ;;  %v350_v47 = vld [vmem:[%s1814_s19 + $0x99] sm:$0xff]  ;;  %383 = vst.msk [vmem:[#allocation2 + $0x168] sm:$0xff] %vm302_vm0, %v348_v45  ;;  %v351_v48 = vld [vmem:[%s1814_s19 + $0xa9] sm:$0xff] }
  0x2c   : > { %384 = vst.msk [vmem:[#allocation2 + $0x170] sm:$0xff] %vm302_vm0, %v349_v46  ;;  %385 = vst.msk [vmem:[#allocation2 + $0x178] sm:$0xff] %vm302_vm0, %v350_v47  ;;  %v352_v49 = vld [vmem:[%s1814_s19 + $0xb1] sm:$0xff]  ;;  %v353_v50 = vld [vmem:[%s1814_s19 + $0xc1] sm:$0xff] }
  0x2d   : > { %386 = vst.msk [vmem:[#allocation2 + $0x180] sm:$0xff] %vm302_vm0, %v351_v48  ;;  %387 = vst.msk [vmem:[#allocation2 + $0x188] sm:$0xff] %vm302_vm0, %v352_v49  ;;  %v354_v51 = vld [vmem:[%s1814_s19 + $0xc9] sm:$0xff]  ;;  %v355_v52 = vld [vmem:[%s1814_s19 + $0xd9] sm:$0xff] }
  0x2e   : > { %388 = vst.msk [vmem:[#allocation2 + $0x190] sm:$0xff] %vm302_vm0, %v353_v50  ;;  %v356_v53 = vld [vmem:[%s1814_s19 + $0xe1] sm:$0xff]  ;;  %389 = vst.msk [vmem:[#allocation2 + $0x198] sm:$0xff] %vm302_vm0, %v354_v51  ;;  %v357_v54 = vld [vmem:[%s1814_s19 + $0xf1] sm:$0xff] }
  0x2f   : > { %390 = vst.msk [vmem:[#allocation2 + $0x1a0] sm:$0xff] %vm302_vm0, %v355_v52  ;;  %391 = vst.msk [vmem:[#allocation2 + $0x1a8] sm:$0xff] %vm302_vm0, %v356_v53  ;;  %v358_v55 = vld [vmem:[%s1814_s19 + $0xf9] sm:$0xff]  ;;  %v359_v56 = vld [vmem:[%s1814_s19 + $0x109] sm:$0xff] }
  0x30   : > { %392 = vst.msk [vmem:[#allocation2 + $0x1b0] sm:$0xff] %vm302_vm0, %v357_v54  ;;  %393 = vst.msk [vmem:[#allocation2 + $0x1b8] sm:$0xff] %vm302_vm0, %v358_v55  ;;  %v360_v60 = vld [vmem:[%s1814_s19 + $0x111] sm:$0xff]  ;;  %v361_v61 = vld [vmem:[%s1814_s19 + $0x121] sm:$0xff] }
  0x31   : > { %394 = vst.msk [vmem:[#allocation2 + $0x1c0] sm:$0xff] %vm302_vm0, %v359_v56  ;;  %v362_v62 = vld [vmem:[%s1814_s19 + $0x129] sm:$0xff]  ;;  %395 = vst.msk [vmem:[#allocation2 + $0x1c8] sm:$0xff] %vm302_vm0, %v360_v60  ;;  %v363_v63 = vld [vmem:[%s1814_s19 + $0x139] sm:$0xff] }
  0x32   : > { %396 = vst.msk [vmem:[#allocation2 + $0x1d0] sm:$0xff] %vm302_vm0, %v361_v61  ;;  %397 = vst.msk [vmem:[#allocation2 + $0x1d8] sm:$0xff] %vm302_vm0, %v362_v62  ;;  %v364_v0 = vld [vmem:[%s1814_s19 + $0x141] sm:$0xff]  ;;  %v365_v1 = vld [vmem:[%s1814_s19 + $0x151] sm:$0xff] }
  0x33   : > { %v1957_v2 = vld [vmem:[%s2962_s2] ss:$0 sm:$0xff]  ;;  %398 = vst.msk [vmem:[#allocation2 + $0x1e0] sm:$0xff] %vm302_vm0, %v363_v63  ;;  %399 = vst.msk [vmem:[#allocation2 + $0x1e8] sm:$0xff] %vm302_vm0, %v364_v0  ;;  %v367_v4 = vld [vmem:[%s1814_s19 + $0x169] sm:$0xff] }
  0x34   : > { %400 = vst.msk [vmem:[#allocation2 + $0x1f0] sm:$0xff] %vm302_vm0, %v365_v1  ;;  %v366_v3 = vld [vmem:[%s1814_s19 + $0x159] sm:$0xff]  ;;  %v368_v5 = vld [vmem:[%s1814_s19 + $0x171] sm:$0xff]  ;;  %402 = vst.msk [vmem:[#allocation2 + $0x200] sm:$0xff] %vm302_vm0, %v367_v4 }
  0x35   : > { %401 = vst.msk [vmem:[#allocation2 + $0x1f8] sm:$0xff] %vm302_vm0, %v366_v3  ;;  %403 = vst.msk [vmem:[#allocation2 + $0x208] sm:$0xff] %vm302_vm0, %v368_v5  ;;  %v369_v6 = vld [vmem:[%s1814_s19 + $0x181] sm:$0xff]  ;;  %v370_v7 = vld [vmem:[%s1814_s19 + $0x189] sm:$0xff] }
  0x36   : > { %v408_v8 = vld [vmem:[#allocation2] sm:$0xff]  ;;  %404 = vst.msk [vmem:[#allocation2 + $0x210] sm:$0xff] %vm302_vm0, %v369_v6  ;;  %405 = vst.msk [vmem:[#allocation2 + $0x218] sm:$0xff] %vm302_vm0, %v370_v7  ;;  %v1974_v10 = vld [vmem:[#allocation2 + $0x8] sm:$0xff] }
  0x37   : > { %v444_v9 = vmul.f32 %v1930_v57, %v408_v8  ;;  %v1976_v11 = vld [vmem:[#allocation2 + $0x10] sm:$0xff]  ;;  %v1978_v12 = vld [vmem:[#allocation2 + $0x18] sm:$0xff]  ;;  %v1981_v13 = vmul.f32 %v1935_v58, %v408_v8  ;;  %v1984_v14 = vmul.f32 %v1940_v59, %v408_v8  ;;  %v445_v15 = vmul.f32 %v1930_v57, %v1974_v10  ;;  %v1997_v18 = vld [vmem:[#allocation2 + $0x20] sm:$0xff] }
  0x38   : > { %v446_v16 = vmul.f32 %v1930_v57, %v1976_v11  ;;  %v447_v17 = vmul.f32 %v1930_v57, %v1978_v12  ;;  %v1999_v19 = vld [vmem:[#allocation2 + $0x28] sm:$0xff]  ;;  %v2001_v20 = vld [vmem:[#allocation2 + $0x30] sm:$0xff]  ;;  %v2005_v21 = vmul.f32 %v1935_v58, %v1974_v10  ;;  %v448_v23 = vmul.f32 %v1930_v57, %v1997_v18  ;;  %v2014_v26 = vld [vmem:[#allocation2 + $0x38] sm:$0xff] }
  0x39   : > { %v482_v22 = vadd.f32 %v1957_v2, %v444_v9  ;;  %v449_v24 = vmul.f32 %v1930_v57, %v1999_v19  ;;  %v450_v25 = vmul.f32 %v1930_v57, %v2001_v20  ;;  %v2016_v27 = vld [vmem:[#allocation2 + $0x40] sm:$0xff]  ;;  %v2018_v28 = vld [vmem:[#allocation2 + $0x48] sm:$0xff]  ;;  %v483_v29 = vadd.f32 %v1957_v2, %v445_v15  ;;  %v2025_v33 = vld [vmem:[#allocation2 + $0x50] sm:$0xff] }
  0x3a   : > { %v484_v30 = vadd.f32 %v1957_v2, %v446_v16  ;;  %v485_v31 = vadd.f32 %v1957_v2, %v447_v17  ;;  %v451_v32 = vmul.f32 %v1930_v57, %v2014_v26  ;;  %v2027_v34 = vld [vmem:[#allocation2 + $0x58] sm:$0xff]  ;;  %v2029_v35 = vld [vmem:[#allocation2 + $0x60] sm:$0xff]  ;;  %v486_v36 = vadd.f32 %v1957_v2, %v448_v23  ;;  %v2038_v40 = vld [vmem:[#allocation2 + $0x68] sm:$0xff] }
  0x3b   : > { %514 = vst.msk [vmem:[%s1989_s4] sm:$0xff] %vm302_vm0, %v482_v22  ;;  %v487_v37 = vadd.f32 %v1957_v2, %v449_v24  ;;  %v488_v38 = vadd.f32 %v1957_v2, %v450_v25  ;;  %v452_v39 = vmul.f32 %v1930_v57, %v2016_v27  ;;  %v2040_v41 = vld [vmem:[#allocation2 + $0x70] sm:$0xff]  ;;  %v2042_v42 = vld [vmem:[#allocation2 + $0x78] sm:$0xff]  ;;  %515 = vst.msk [vmem:[%s1989_s4 + $0x8] sm:$0xff] %vm302_vm0, %v483_v29 }
  0x3c   : > { %516 = vst.msk [vmem:[%s1989_s4 + $0x10] sm:$0xff] %vm302_vm0, %v484_v30  ;;  %517 = vst.msk [vmem:[%s1989_s4 + $0x18] sm:$0xff] %vm302_vm0, %v485_v31  ;;  %v489_v43 = vadd.f32 %v1957_v2, %v451_v32  ;;  %v453_v44 = vmul.f32 %v1930_v57, %v2018_v28  ;;  %v454_v45 = vmul.f32 %v1930_v57, %v2025_v33  ;;  %v2057_v47 = vld [vmem:[#allocation2 + $0x80] sm:$0xff]  ;;  %v2072_v52 = vld [vmem:[#allocation2 + $0x88] sm:$0xff] }
  0x3d   : > { %v455_v46 = vmul.f32 %v1930_v57, %v2027_v34  ;;  %518 = vst.msk [vmem:[%s1989_s4 + $0x20] sm:$0xff] %vm302_vm0, %v486_v36  ;;  %519 = vst.msk [vmem:[%s1989_s4 + $0x28] sm:$0xff] %vm302_vm0, %v487_v37  ;;  %v490_v48 = vadd.f32 %v1957_v2, %v452_v39  ;;  %v456_v49 = vmul.f32 %v1930_v57, %v2029_v35  ;;  %v2074_v53 = vld [vmem:[#allocation2 + $0x90] sm:$0xff]  ;;  %v2076_v54 = vld [vmem:[#allocation2 + $0x98] sm:$0xff] }
  0x3e   : > { %520 = vst.msk [vmem:[%s1989_s4 + $0x30] sm:$0xff] %vm302_vm0, %v488_v38  ;;  %v457_v50 = vmul.f32 %v1930_v57, %v2038_v40  ;;  %v458_v51 = vmul.f32 %v1930_v57, %v2040_v41  ;;  %521 = vst.msk [vmem:[%s1989_s4 + $0x38] sm:$0xff] %vm302_vm0, %v489_v43  ;;  %v491_v55 = vadd.f32 %v1957_v2, %v453_v44  ;;  %v2085_v62 = vld [vmem:[#allocation2 + $0xa0] sm:$0xff]  ;;  %v2087_v63 = vld [vmem:[#allocation2 + $0xa8] sm:$0xff] }
  0x3f   : > { %v492_v56 = vadd.f32 %v1957_v2, %v454_v45  ;;  %v493_v60 = vadd.f32 %v1957_v2, %v455_v46  ;;  %v459_v61 = vmul.f32 %v1930_v57, %v2042_v42  ;;  %v2089_v0 = vld [vmem:[#allocation2 + $0xb0] sm:$0xff]  ;;  %522 = vst.msk [vmem:[%s1989_s4 + $0x40] sm:$0xff] %vm302_vm0, %v490_v48  ;;  %v494_v1 = vadd.f32 %v1957_v2, %v456_v49  ;;  %v2098_v6 = vld [vmem:[#allocation2 + $0xb8] sm:$0xff]  ;;  %v2113_v16 = vld [vmem:[#allocation2 + $0xc0] sm:$0xff] }
  0x40   : > { %v495_v3 = vadd.f32 %v1957_v2, %v457_v50  ;;  %v496_v4 = vadd.f32 %v1957_v2, %v458_v51  ;;  %v460_v5 = vmul.f32 %v1930_v57, %v2057_v47  ;;  %523 = vst.msk [vmem:[%s1989_s4 + $0x48] sm:$0xff] %vm302_vm0, %v491_v55  ;;  %v461_v8 = vmul.f32 %v1930_v57, %v2072_v52  ;;  %v2128_v25 = vld [vmem:[#allocation2 + $0xc8] sm:$0xff]  ;;  %v2130_v29 = vld [vmem:[#allocation2 + $0xd0] sm:$0xff]  ;;  %v2132_v30 = vld [vmem:[#allocation2 + $0xd8] sm:$0xff] }
  0x41   : > { %524 = vst.msk [vmem:[%s1989_s4 + $0x50] sm:$0xff] %vm302_vm0, %v492_v56  ;;  %525 = vst.msk [vmem:[%s1989_s4 + $0x58] sm:$0xff] %vm302_vm0, %v493_v60  ;;  %v497_v7 = vadd.f32 %v1957_v2, %v459_v61  ;;  %v462_v9 = vmul.f32 %v1930_v57, %v2074_v53  ;;  %v463_v15 = vmul.f32 %v1930_v57, %v2076_v54  ;;  %v2141_v38 = vld [vmem:[#allocation2 + $0xe0] sm:$0xff]  ;;  %v2143_v39 = vld [vmem:[#allocation2 + $0xe8] sm:$0xff] }
  0x42   : > { %526 = vst.msk [vmem:[%s1989_s4 + $0x60] sm:$0xff] %vm302_vm0, %v494_v1  ;;  %527 = vst.msk [vmem:[%s1989_s4 + $0x68] sm:$0xff] %vm302_vm0, %v495_v3  ;;  %v498_v17 = vadd.f32 %v1957_v2, %v460_v5  ;;  %v464_v22 = vmul.f32 %v1930_v57, %v2085_v62  ;;  %v465_v23 = vmul.f32 %v1930_v57, %v2087_v63  ;;  %v2145_v43 = vld [vmem:[#allocation2 + $0xf0] sm:$0xff]  ;;  %v2154_v49 = vld [vmem:[#allocation2 + $0xf8] sm:$0xff] }
  0x43   : > { %528 = vst.msk [vmem:[%s1989_s4 + $0x70] sm:$0xff] %vm302_vm0, %v496_v4  ;;  %v466_v24 = vmul.f32 %v1930_v57, %v2089_v0  ;;  %529 = vst.msk [vmem:[%s1989_s4 + $0x78] sm:$0xff] %vm302_vm0, %v497_v7  ;;  %v499_v31 = vadd.f32 %v1957_v2, %v461_v8  ;;  %v500_v32 = vadd.f32 %v1957_v2, %v462_v9  ;;  %v2172_v60 = vld [vmem:[%s2961_s1 + $0x6] ss:$0 sm:$0xff]  ;;  %v2174_v61 = vld [vmem:[#allocation2 + $0x110] sm:$0xff] }
  0x44   : > { %v501_v36 = vadd.f32 %v1957_v2, %v463_v15  ;;  %v467_v37 = vmul.f32 %v1930_v57, %v2098_v6  ;;  %530 = vst.msk [vmem:[%s1989_s4 + $0x80] sm:$0xff] %vm302_vm0, %v498_v17  ;;  %v502_v44 = vadd.f32 %v1957_v2, %v464_v22  ;;  %v503_v45 = vadd.f32 %v1957_v2, %v465_v23  ;;  %v2189_v7 = vld [vmem:[#allocation2 + $0x118] sm:$0xff]  ;;  %v2191_v8 = vld [vmem:[#allocation2 + $0x120] sm:$0xff]  ;;  %v2200_v23 = vld [vmem:[#allocation2 + $0x128] sm:$0xff] }
  0x45   : > { %v504_v46 = vadd.f32 %v1957_v2, %v466_v24  ;;  %v468_v48 = vmul.f32 %v1930_v57, %v2113_v16  ;;  %531 = vst.msk [vmem:[%s1989_s4 + $0x88] sm:$0xff] %vm302_vm0, %v499_v31  ;;  %532 = vst.msk [vmem:[%s1989_s4 + $0x90] sm:$0xff] %vm302_vm0, %v500_v32  ;;  %v469_v51 = vmul.f32 %v1930_v57, %v2128_v25 }
  0x46   : > { %533 = vst.msk [vmem:[%s1989_s4 + $0x98] sm:$0xff] %vm302_vm0, %v501_v36  ;;  %v505_v50 = vadd.f32 %v1957_v2, %v467_v37  ;;  %v470_v55 = vmul.f32 %v1930_v57, %v2130_v29  ;;  %v471_v56 = vmul.f32 %v1930_v57, %v2132_v30  ;;  %534 = vst.msk [vmem:[%s1989_s4 + $0xa0] sm:$0xff] %vm302_vm0, %v502_v44  ;;  %v2209_v37 = vld [vmem:[#allocation2 + $0x130] sm:$0xff] }
  0x47   : > { %535 = vst.msk [vmem:[%s1989_s4 + $0xa8] sm:$0xff] %vm302_vm0, %v503_v45  ;;  %536 = vst.msk [vmem:[%s1989_s4 + $0xb0] sm:$0xff] %vm302_vm0, %v504_v46  ;;  %v506_v1 = vadd.f32 %v1957_v2, %v468_v48  ;;  %v472_v3 = vmul.f32 %v1930_v57, %v2141_v38  ;;  %v473_v4 = vmul.f32 %v1930_v57, %v2143_v39  ;;  %v2224_v48 = vld [vmem:[#allocation2 + $0x138] sm:$0xff] }
  0x48   : > { %v474_v5 = vmul.f32 %v1930_v57, %v2145_v43  ;;  %537 = vst.msk [vmem:[%s1989_s4 + $0xb8] sm:$0xff] %vm302_vm0, %v505_v50  ;;  %v507_v9 = vadd.f32 %v1957_v2, %v469_v51  ;;  %v508_v15 = vadd.f32 %v1957_v2, %v470_v55  ;;  %v509_v17 = vadd.f32 %v1957_v2, %v471_v56 }
  0x49   : > { %v475_v22 = vmul.f32 %v1930_v57, %v2154_v49  ;;  %538 = vst.msk [vmem:[%s1989_s4 + $0xc0] sm:$0xff] %vm302_vm0, %v506_v1  ;;  %v510_v24 = vadd.f32 %v1957_v2, %v472_v3  ;;  %v511_v31 = vadd.f32 %v1957_v2, %v473_v4  ;;  %v652_v36 = vmul.f32 %v2172_v60, %v2174_v61  ;;  %v2239_v1 = vld [vmem:[#allocation2 + $0x140] sm:$0xff] }
  0x4a   : > { %v512_v32 = vadd.f32 %v1957_v2, %v474_v5  ;;  %539 = vst.msk [vmem:[%s1989_s4 + $0xc8] sm:$0xff] %vm302_vm0, %v507_v9  ;;  %540 = vst.msk [vmem:[%s1989_s4 + $0xd0] sm:$0xff] %vm302_vm0, %v508_v15  ;;  %v653_v44 = vmul.f32 %v2172_v60, %v2189_v7  ;;  %v585_v45 = vmul.f32 %v1935_v58, %v1976_v11  ;;  %v2248_v9 = vld [vmem:[#allocation2 + $0x148] sm:$0xff] }
  0x4b   : > { %541 = vst.msk [vmem:[%s1989_s4 + $0xd8] sm:$0xff] %vm302_vm0, %v509_v17  ;;  %v513_v57 = vadd.f32 %v1957_v2, %v475_v22  ;;  %v654_v46 = vmul.f32 %v2172_v60, %v2191_v8  ;;  %542 = vst.msk [vmem:[%s1989_s4 + $0xe0] sm:$0xff] %vm302_vm0, %v510_v24  ;;  %v684_v50 = vadd.f32 %v652_v36, %v1981_v13  ;;  %v2255_v24 = vld [vmem:[#allocation2 + $0x150] sm:$0xff] }
  0x4c   : > { %543 = vst.msk [vmem:[%s1989_s4 + $0xe8] sm:$0xff] %vm302_vm0, %v511_v31  ;;  %544 = vst.msk [vmem:[%s1989_s4 + $0xf0] sm:$0xff] %vm302_vm0, %v512_v32  ;;  %v586_v51 = vmul.f32 %v1935_v58, %v1978_v12  ;;  %v655_v55 = vmul.f32 %v2172_v60, %v2200_v23  ;;  %v587_v56 = vmul.f32 %v1935_v58, %v1997_v18 }
  0x4d   : > { %545 = vst.msk [vmem:[%s1989_s4 + $0xf8] sm:$0xff] %vm302_vm0, %v513_v57  ;;  %v685_v3 = vadd.f32 %v653_v44, %v2005_v21  ;;  %v686_v4 = vadd.f32 %v654_v46, %v585_v45  ;;  %v656_v13 = vmul.f32 %v2172_v60, %v2209_v37  ;;  %v588_v5 = vmul.f32 %v1935_v58, %v1999_v19  ;;  %v2261_v44 = vld [vmem:[#allocation2 + $0x158] sm:$0xff] }
  0x4e   : > { %v716_v15 = vadd.f32 %v1957_v2, %v684_v50  ;;  %v687_v17 = vadd.f32 %v655_v55, %v586_v51  ;;  %v657_v22 = vmul.f32 %v2172_v60, %v2224_v48  ;;  %v589_v21 = vmul.f32 %v1935_v58, %v2001_v20  ;;  %2970 = vst [vmem:[#allocation3_spill] sm:$0xff] %v2261_v44  ;;  %v2270_v55 = vld [vmem:[#allocation2 + $0x160] sm:$0xff] }
  0x4f   : > { %v717_v31 = vadd.f32 %v1957_v2, %v685_v3  ;;  %v718_v32 = vadd.f32 %v1957_v2, %v686_v4  ;;  %v688_v36 = vadd.f32 %v656_v13, %v587_v56  ;;  %v658_v57 = vmul.f32 %v2172_v60, %v2239_v1  ;;  %2971 = vst [vmem:[#allocation4_spill] sm:$0xff] %v2270_v55 }
  0x50   : > { %1612 = vst.msk [vmem:[%s1989_s4 + $0x100] sm:$0xff] %vm302_vm0, %v716_v15  ;;  %v719_v45 = vadd.f32 %v1957_v2, %v687_v17  ;;  %v689_v46 = vadd.f32 %v657_v22, %v588_v5  ;;  %v590_v50 = vmul.f32 %v1935_v58, %v2014_v26  ;;  %v659_v51 = vmul.f32 %v2172_v60, %v2248_v9  ;;  %v2281_v5 = vld [vmem:[#allocation2 + $0x168] sm:$0xff] }
  0x51   : > { %1613 = vst.msk [vmem:[%s1989_s4 + $0x108] sm:$0xff] %vm302_vm0, %v717_v31  ;;  %1614 = vst.msk [vmem:[%s1989_s4 + $0x110] sm:$0xff] %vm302_vm0, %v718_v32  ;;  %v720_v56 = vadd.f32 %v1957_v2, %v688_v36  ;;  %v690_v3 = vadd.f32 %v658_v57, %v589_v21  ;;  %v591_v4 = vmul.f32 %v1935_v58, %v2016_v27  ;;  %v2290_v31 = vld [vmem:[#allocation2 + $0x170] sm:$0xff] }
  0x52   : > { %v660_v13 = vmul.f32 %v2172_v60, %v2255_v24  ;;  %2972 = vst [vmem:[#allocation5_spill] sm:$0xff] %v2281_v5  ;;  %1615 = vst.msk [vmem:[%s1989_s4 + $0x118] sm:$0xff] %vm302_vm0, %v719_v45  ;;  %v721_v15 = vadd.f32 %v1957_v2, %v689_v46  ;;  %v691_v17 = vadd.f32 %v659_v51, %v590_v50  ;;  %v2299_v46 = vld [vmem:[#allocation2 + $0x178] sm:$0xff] }
  0x53   : > { %v592_v22 = vmul.f32 %v1935_v58, %v2018_v28  ;;  %v661_v21 = vmul.f32 %v2172_v60, %v2261_v44  ;;  %2973 = vst [vmem:[#allocation6_spill] sm:$0xff] %v2290_v31  ;;  %1616 = vst.msk [vmem:[%s1989_s4 + $0x120] sm:$0xff] %vm302_vm0, %v720_v56  ;;  %v722_v32 = vadd.f32 %v1957_v2, %v690_v3 }
  0x54   : > { %v692_v36 = vadd.f32 %v660_v13, %v591_v4  ;;  %v593_v57 = vmul.f32 %v1935_v58, %v2025_v33  ;;  %v662_v45 = vmul.f32 %v2172_v60, %v2270_v55  ;;  %2974 = vst [vmem:[#allocation7_spill] sm:$0xff] %v2299_v46  ;;  %1617 = vst.msk [vmem:[%s1989_s4 + $0x128] sm:$0xff] %vm302_vm0, %v721_v15  ;;  %v630_v4 = vld [vmem:[#allocation2 + $0x180] sm:$0xff] }
  0x55   : > { %v723_v50 = vadd.f32 %v1957_v2, %v691_v17  ;;  %v693_v51 = vadd.f32 %v661_v21, %v592_v22  ;;  %v594_v56 = vmul.f32 %v1935_v58, %v2027_v34  ;;  %v663_v3 = vmul.f32 %v2172_v60, %v2281_v5  ;;  %1618 = vst.msk [vmem:[%s1989_s4 + $0x130] sm:$0xff] %vm302_vm0, %v722_v32  ;;  %v631_v22 = vld [vmem:[#allocation2 + $0x188] sm:$0xff] }
  0x56   : > { %v724_v13 = vadd.f32 %v1957_v2, %v692_v36  ;;  %v694_v55 = vadd.f32 %v662_v45, %v593_v57  ;;  %v595_v15 = vmul.f32 %v1935_v58, %v2029_v35  ;;  %v664_v17 = vmul.f32 %v2172_v60, %v2290_v31  ;;  %v632_v57 = vld [vmem:[#allocation2 + $0x190] sm:$0xff] }
  0x57   : > { %1619 = vst.msk [vmem:[%s1989_s4 + $0x138] sm:$0xff] %vm302_vm0, %v723_v50  ;;  %v725_v21 = vadd.f32 %v1957_v2, %v693_v51  ;;  %v695_v44 = vadd.f32 %v663_v3, %v594_v56  ;;  %v596_v32 = vmul.f32 %v1935_v58, %v2038_v40  ;;  %v665_v36 = vmul.f32 %v2172_v60, %v2299_v46  ;;  %v633_v56 = vld [vmem:[#allocation2 + $0x198] sm:$0xff] }
  0x58   : > { %1620 = vst.msk [vmem:[%s1989_s4 + $0x140] sm:$0xff] %vm302_vm0, %v724_v13  ;;  %v726_v45 = vadd.f32 %v1957_v2, %v694_v55  ;;  %v696_v5 = vadd.f32 %v664_v17, %v595_v15  ;;  %v597_v50 = vmul.f32 %v1935_v58, %v2040_v41  ;;  %v666_v51 = vmul.f32 %v2172_v60, %v630_v4  ;;  %v634_v55 = vld [vmem:[#allocation2 + $0x1a0] sm:$0xff] }
  0x59   : > { %1621 = vst.msk [vmem:[%s1989_s4 + $0x148] sm:$0xff] %vm302_vm0, %v725_v21  ;;  %v727_v3 = vadd.f32 %v1957_v2, %v695_v44  ;;  %v697_v31 = vadd.f32 %v665_v36, %v596_v32  ;;  %v598_v46 = vmul.f32 %v1935_v58, %v2042_v42  ;;  %v667_v13 = vmul.f32 %v2172_v60, %v631_v22  ;;  %v635_v44 = vld [vmem:[#allocation2 + $0x1a8] sm:$0xff] }
  0x5a   : > { %1622 = vst.msk [vmem:[%s1989_s4 + $0x150] sm:$0xff] %vm302_vm0, %v726_v45  ;;  %v728_v15 = vadd.f32 %v1957_v2, %v696_v5  ;;  %v698_v17 = vadd.f32 %v666_v51, %v597_v50  ;;  %v599_v4 = vmul.f32 %v1935_v58, %v2057_v47  ;;  %v668_v21 = vmul.f32 %v2172_v60, %v632_v57  ;;  %v636_v5 = vld [vmem:[#allocation2 + $0x1b0] sm:$0xff] }
  0x5b   : > { %1623 = vst.msk [vmem:[%s1989_s4 + $0x158] sm:$0xff] %vm302_vm0, %v727_v3  ;;  %v729_v32 = vadd.f32 %v1957_v2, %v697_v31  ;;  %v699_v36 = vadd.f32 %v667_v13, %v598_v46  ;;  %v600_v22 = vmul.f32 %v1935_v58, %v2072_v52  ;;  %v669_v45 = vmul.f32 %v2172_v60, %v633_v56  ;;  %v637_v31 = vld [vmem:[#allocation2 + $0x1b8] sm:$0xff] }
  0x5c   : > { %1624 = vst.msk [vmem:[%s1989_s4 + $0x160] sm:$0xff] %vm302_vm0, %v728_v15  ;;  %v730_v50 = vadd.f32 %v1957_v2, %v698_v17  ;;  %v700_v51 = vadd.f32 %v668_v21, %v599_v4  ;;  %v601_v57 = vmul.f32 %v1935_v58, %v2074_v53  ;;  %v670_v3 = vmul.f32 %v2172_v60, %v634_v55  ;;  %v638_v17 = vld [vmem:[#allocation2 + $0x1c0] sm:$0xff] }
  0x5d   : > { %1625 = vst.msk [vmem:[%s1989_s4 + $0x168] sm:$0xff] %vm302_vm0, %v729_v32  ;;  %v731_v46 = vadd.f32 %v1957_v2, %v699_v36  ;;  %v701_v13 = vadd.f32 %v669_v45, %v600_v22  ;;  %v602_v56 = vmul.f32 %v1935_v58, %v2076_v54  ;;  %v671_v15 = vmul.f32 %v2172_v60, %v635_v44  ;;  %v639_v36 = vld [vmem:[#allocation2 + $0x1c8] sm:$0xff] }
  0x5e   : > { %1626 = vst.msk [vmem:[%s1989_s4 + $0x170] sm:$0xff] %vm302_vm0, %v730_v50  ;;  %v732_v4 = vadd.f32 %v1957_v2, %v700_v51  ;;  %v702_v21 = vadd.f32 %v670_v3, %v601_v57  ;;  %v603_v55 = vmul.f32 %v1935_v58, %v2085_v62  ;;  %v672_v32 = vmul.f32 %v2172_v60, %v636_v5  ;;  %v640_v51 = vld [vmem:[#allocation2 + $0x1d0] sm:$0xff] }
  0x5f   : > { %1627 = vst.msk [vmem:[%s1989_s4 + $0x178] sm:$0xff] %vm302_vm0, %v731_v46  ;;  %v733_v22 = vadd.f32 %v1957_v2, %v701_v13  ;;  %v703_v45 = vadd.f32 %v671_v15, %v602_v56  ;;  %v604_v44 = vmul.f32 %v1935_v58, %v2087_v63  ;;  %v673_v50 = vmul.f32 %v2172_v60, %v637_v31  ;;  %v641_v13 = vld [vmem:[#allocation2 + $0x1d8] sm:$0xff] }
  0x60   : > { %1628 = vst.msk [vmem:[%s1989_s4 + $0x180] sm:$0xff] %vm302_vm0, %v732_v4  ;;  %v734_v57 = vadd.f32 %v1957_v2, %v702_v21  ;;  %v704_v3 = vadd.f32 %v672_v32, %v603_v55  ;;  %v605_v5 = vmul.f32 %v1935_v58, %v2089_v0  ;;  %v674_v46 = vmul.f32 %v2172_v60, %v638_v17  ;;  %v642_v21 = vld [vmem:[#allocation2 + $0x1e0] sm:$0xff] }
  0x61   : > { %1629 = vst.msk [vmem:[%s1989_s4 + $0x188] sm:$0xff] %vm302_vm0, %v733_v22  ;;  %v735_v56 = vadd.f32 %v1957_v2, %v703_v45  ;;  %v705_v15 = vadd.f32 %v673_v50, %v604_v44  ;;  %v606_v31 = vmul.f32 %v1935_v58, %v2098_v6  ;;  %v675_v4 = vmul.f32 %v2172_v60, %v639_v36  ;;  %v643_v45 = vld [vmem:[#allocation2 + $0x1e8] sm:$0xff] }
  0x62   : > { %1630 = vst.msk [vmem:[%s1989_s4 + $0x190] sm:$0xff] %vm302_vm0, %v734_v57  ;;  %v736_v55 = vadd.f32 %v1957_v2, %v704_v3  ;;  %v706_v32 = vadd.f32 %v674_v46, %v605_v5  ;;  %v607_v17 = vmul.f32 %v1935_v58, %v2113_v16  ;;  %v676_v22 = vmul.f32 %v2172_v60, %v640_v51  ;;  %v644_v3 = vld [vmem:[#allocation2 + $0x1f0] sm:$0xff] }
  0x63   : > { %1631 = vst.msk [vmem:[%s1989_s4 + $0x198] sm:$0xff] %vm302_vm0, %v735_v56  ;;  %v737_v44 = vadd.f32 %v1957_v2, %v705_v15  ;;  %v707_v50 = vadd.f32 %v675_v4, %v606_v31  ;;  %v608_v36 = vmul.f32 %v1935_v58, %v2128_v25  ;;  %v677_v57 = vmul.f32 %v2172_v60, %v641_v13  ;;  %v645_v15 = vld [vmem:[#allocation2 + $0x1f8] sm:$0xff] }
  0x64   : > { %1632 = vst.msk [vmem:[%s1989_s4 + $0x1a0] sm:$0xff] %vm302_vm0, %v736_v55  ;;  %v738_v5 = vadd.f32 %v1957_v2, %v706_v32  ;;  %v708_v46 = vadd.f32 %v676_v22, %v607_v17  ;;  %v609_v51 = vmul.f32 %v1935_v58, %v2130_v29  ;;  %v678_v56 = vmul.f32 %v2172_v60, %v642_v21  ;;  %v646_v32 = vld [vmem:[#allocation2 + $0x200] sm:$0xff] }
  0x65   : > { %1633 = vst.msk [vmem:[%s1989_s4 + $0x1a8] sm:$0xff] %vm302_vm0, %v737_v44  ;;  %v739_v31 = vadd.f32 %v1957_v2, %v707_v50  ;;  %v709_v4 = vadd.f32 %v677_v57, %v608_v36  ;;  %v610_v13 = vmul.f32 %v1935_v58, %v2132_v30  ;;  %v679_v55 = vmul.f32 %v2172_v60, %v643_v45  ;;  %v647_v50 = vld [vmem:[#allocation2 + $0x208] sm:$0xff] }
  0x66   : > { %1634 = vst.msk [vmem:[%s1989_s4 + $0x1b0] sm:$0xff] %vm302_vm0, %v738_v5  ;;  %v740_v17 = vadd.f32 %v1957_v2, %v708_v46  ;;  %v710_v22 = vadd.f32 %v678_v56, %v609_v51  ;;  %v611_v21 = vmul.f32 %v1935_v58, %v2141_v38  ;;  %v680_v44 = vmul.f32 %v2172_v60, %v644_v3  ;;  %v2421_v46 = vld [vmem:[%s2961_s1 + $0x9] ss:$0 sm:$0xff] }
  0x67   : > { %1635 = vst.msk [vmem:[%s1989_s4 + $0x1b8] sm:$0xff] %vm302_vm0, %v739_v31  ;;  %v741_v36 = vadd.f32 %v1957_v2, %v709_v4  ;;  %v711_v57 = vadd.f32 %v679_v55, %v610_v13  ;;  %v612_v45 = vmul.f32 %v1935_v58, %v2143_v39  ;;  %v681_v5 = vmul.f32 %v2172_v60, %v645_v15 }
  0x68   : > { %1636 = vst.msk [vmem:[%s1989_s4 + $0x1c0] sm:$0xff] %vm302_vm0, %v740_v17  ;;  %v742_v3 = vadd.f32 %v1957_v2, %v710_v22  ;;  %v712_v51 = vadd.f32 %v680_v44, %v611_v21  ;;  %v613_v56 = vmul.f32 %v1935_v58, %v2145_v43  ;;  %v682_v31 = vmul.f32 %v2172_v60, %v646_v32 }
  0x69   : > { %1637 = vst.msk [vmem:[%s1989_s4 + $0x1c8] sm:$0xff] %vm302_vm0, %v741_v36  ;;  %v743_v15 = vadd.f32 %v1957_v2, %v711_v57  ;;  %v713_v4 = vadd.f32 %v681_v5, %v612_v45  ;;  %v614_v13 = vmul.f32 %v1935_v58, %v2154_v49  ;;  %v683_v55 = vmul.f32 %v2172_v60, %v647_v50 }
  0x6a   : > { %1638 = vst.msk [vmem:[%s1989_s4 + $0x1d0] sm:$0xff] %vm302_vm0, %v742_v3  ;;  %v744_v17 = vadd.f32 %v1957_v2, %v712_v51  ;;  %v714_v22 = vadd.f32 %v682_v31, %v613_v56  ;;  %v889_v32 = vmul.f32 %v2421_v46, %v1976_v11  ;;  %v819_v21 = vmul.f32 %v1940_v59, %v1974_v10 }
  0x6b   : > { %1639 = vst.msk [vmem:[%s1989_s4 + $0x1d8] sm:$0xff] %vm302_vm0, %v743_v15  ;;  %v745_v44 = vadd.f32 %v1957_v2, %v713_v4  ;;  %v715_v58 = vadd.f32 %v683_v55, %v614_v13  ;;  %v890_v60 = vmul.f32 %v2421_v46, %v1978_v12  ;;  %v820_v50 = vmul.f32 %v1940_v59, %v1976_v11 }
  0x6c   : > { %1640 = vst.msk [vmem:[%s1989_s4 + $0x1e0] sm:$0xff] %vm302_vm0, %v744_v17  ;;  %v746_v36 = vadd.f32 %v1957_v2, %v714_v22  ;;  %v921_v57 = vadd.f32 %v889_v32, %v1984_v14  ;;  %v891_v10 = vmul.f32 %v2421_v46, %v1997_v18  ;;  %v821_v45 = vmul.f32 %v1940_v59, %v1978_v12 }
  0x6d   : > { %1641 = vst.msk [vmem:[%s1989_s4 + $0x1e8] sm:$0xff] %vm302_vm0, %v745_v44  ;;  %v747_v5 = vadd.f32 %v1957_v2, %v715_v58  ;;  %v922_v3 = vadd.f32 %v890_v60, %v819_v21  ;;  %v892_v11 = vmul.f32 %v2421_v46, %v1999_v19  ;;  %v822_v51 = vmul.f32 %v1940_v59, %v1997_v18 }
  0x6e   : > { %1642 = vst.msk [vmem:[%s1989_s4 + $0x1f0] sm:$0xff] %vm302_vm0, %v746_v36  ;;  %v953_v14 = vadd.f32 %v1957_v2, %v921_v57  ;;  %v923_v56 = vadd.f32 %v891_v10, %v820_v50  ;;  %v893_v12 = vmul.f32 %v2421_v46, %v2001_v20  ;;  %v823_v31 = vmul.f32 %v1940_v59, %v1999_v19 }
  0x6f   : > { %1643 = vst.msk [vmem:[%s1989_s4 + $0x1f8] sm:$0xff] %vm302_vm0, %v747_v5  ;;  %v954_v15 = vadd.f32 %v1957_v2, %v922_v3  ;;  %v924_v4 = vadd.f32 %v892_v11, %v821_v45  ;;  %v894_v18 = vmul.f32 %v2421_v46, %v2014_v26  ;;  %v824_v13 = vmul.f32 %v1940_v59, %v2001_v20 }
  0x70   : > { %1647 = vst.msk [vmem:[%s1989_s4 + $0x200] sm:$0xff] %vm302_vm0, %v953_v14  ;;  %v955_v55 = vadd.f32 %v1957_v2, %v923_v56  ;;  %v925_v17 = vadd.f32 %v893_v12, %v822_v51  ;;  %v895_v19 = vmul.f32 %v2421_v46, %v2016_v27  ;;  %v825_v22 = vmul.f32 %v1940_v59, %v2014_v26 }
  0x71   : > { %1648 = vst.msk [vmem:[%s1989_s4 + $0x208] sm:$0xff] %vm302_vm0, %v954_v15  ;;  %v956_v32 = vadd.f32 %v1957_v2, %v924_v4  ;;  %v926_v21 = vadd.f32 %v894_v18, %v823_v31  ;;  %v896_v20 = vmul.f32 %v2421_v46, %v2018_v28  ;;  %v826_v44 = vmul.f32 %v1940_v59, %v2016_v27 }
  0x72   : > { %1649 = vst.msk [vmem:[%s1989_s4 + $0x210] sm:$0xff] %vm302_vm0, %v955_v55  ;;  %v957_v58 = vadd.f32 %v1957_v2, %v925_v17  ;;  %v927_v60 = vadd.f32 %v895_v19, %v824_v13  ;;  %v897_v26 = vmul.f32 %v2421_v46, %v2025_v33  ;;  %v827_v50 = vmul.f32 %v1940_v59, %v2018_v28 }
  0x73   : > { %1650 = vst.msk [vmem:[%s1989_s4 + $0x218] sm:$0xff] %vm302_vm0, %v956_v32  ;;  %v958_v36 = vadd.f32 %v1957_v2, %v926_v21  ;;  %v928_v57 = vadd.f32 %v896_v20, %v825_v22  ;;  %v898_v27 = vmul.f32 %v2421_v46, %v2027_v34  ;;  %v828_v10 = vmul.f32 %v1940_v59, %v2025_v33 }
  0x74   : > { %1651 = vst.msk [vmem:[%s1989_s4 + $0x220] sm:$0xff] %vm302_vm0, %v957_v58  ;;  %v959_v45 = vadd.f32 %v1957_v2, %v927_v60  ;;  %v929_v5 = vadd.f32 %v897_v26, %v826_v44  ;;  %v899_v28 = vmul.f32 %v2421_v46, %v2029_v35  ;;  %v829_v3 = vmul.f32 %v1940_v59, %v2027_v34 }
  0x75   : > { %1652 = vst.msk [vmem:[%s1989_s4 + $0x228] sm:$0xff] %vm302_vm0, %v958_v36  ;;  %v960_v11 = vadd.f32 %v1957_v2, %v928_v57  ;;  %v930_v51 = vadd.f32 %v898_v27, %v827_v50  ;;  %v900_v33 = vmul.f32 %v2421_v46, %v2038_v40  ;;  %v830_v14 = vmul.f32 %v1940_v59, %v2029_v35 }
  0x76   : > { %1653 = vst.msk [vmem:[%s1989_s4 + $0x230] sm:$0xff] %vm302_vm0, %v959_v45  ;;  %v961_v56 = vadd.f32 %v1957_v2, %v929_v5  ;;  %v931_v12 = vadd.f32 %v899_v28, %v828_v10  ;;  %v901_v34 = vmul.f32 %v2421_v46, %v2040_v41  ;;  %v831_v31 = vmul.f32 %v1940_v59, %v2038_v40 }
  0x77   : > { %1654 = vst.msk [vmem:[%s1989_s4 + $0x238] sm:$0xff] %vm302_vm0, %v960_v11  ;;  %v962_v15 = vadd.f32 %v1957_v2, %v930_v51  ;;  %v932_v4 = vadd.f32 %v900_v33, %v829_v3  ;;  %v902_v35 = vmul.f32 %v2421_v46, %v2042_v42  ;;  %v832_v18 = vmul.f32 %v1940_v59, %v2040_v41 }
  0x78   : > { %1655 = vst.msk [vmem:[%s1989_s4 + $0x240] sm:$0xff] %vm302_vm0, %v961_v56  ;;  %v963_v13 = vadd.f32 %v1957_v2, %v931_v12  ;;  %v933_v55 = vadd.f32 %v901_v34, %v830_v14  ;;  %v903_v40 = vmul.f32 %v2421_v46, %v2057_v47  ;;  %v833_v17 = vmul.f32 %v1940_v59, %v2042_v42 }
  0x79   : > { %1656 = vst.msk [vmem:[%s1989_s4 + $0x248] sm:$0xff] %vm302_vm0, %v962_v15  ;;  %v964_v19 = vadd.f32 %v1957_v2, %v932_v4  ;;  %v934_v22 = vadd.f32 %v902_v35, %v831_v31  ;;  %v904_v41 = vmul.f32 %v2421_v46, %v2072_v52  ;;  %v834_v32 = vmul.f32 %v1940_v59, %v2057_v47 }
  0x7a   : > { %1657 = vst.msk [vmem:[%s1989_s4 + $0x250] sm:$0xff] %vm302_vm0, %v963_v13  ;;  %v965_v21 = vadd.f32 %v1957_v2, %v933_v55  ;;  %v935_v20 = vadd.f32 %v903_v40, %v832_v18  ;;  %v905_v42 = vmul.f32 %v2421_v46, %v2074_v53  ;;  %v835_v44 = vmul.f32 %v1940_v59, %v2072_v52 }
  0x7b   : > { %1658 = vst.msk [vmem:[%s1989_s4 + $0x258] sm:$0xff] %vm302_vm0, %v964_v19  ;;  %v966_v58 = vadd.f32 %v1957_v2, %v934_v22  ;;  %v936_v60 = vadd.f32 %v904_v41, %v833_v17  ;;  %v906_v47 = vmul.f32 %v2421_v46, %v2076_v54  ;;  %v836_v26 = vmul.f32 %v1940_v59, %v2074_v53 }
  0x7c   : > { %1659 = vst.msk [vmem:[%s1989_s4 + $0x260] sm:$0xff] %vm302_vm0, %v965_v21  ;;  %v967_v50 = vadd.f32 %v1957_v2, %v935_v20  ;;  %v937_v36 = vadd.f32 %v905_v42, %v834_v32  ;;  %v907_v52 = vmul.f32 %v2421_v46, %v2085_v62  ;;  %v837_v57 = vmul.f32 %v1940_v59, %v2076_v54  ;;  %v2632_v20 = vld [vmem:[#allocation2 + $0x100] sm:$0xff] }
  0x7d   : > { %1660 = vst.msk [vmem:[%s1989_s4 + $0x268] sm:$0xff] %vm302_vm0, %v966_v58  ;;  %v968_v27 = vadd.f32 %v1957_v2, %v936_v60  ;;  %v938_v10 = vadd.f32 %v906_v47, %v835_v44  ;;  %v908_v53 = vmul.f32 %v2421_v46, %v2087_v63  ;;  %v838_v45 = vmul.f32 %v1940_v59, %v2085_v62  ;;  %v2641_v60 = vld [vmem:[#allocation2 + $0x108] sm:$0xff]  ;;  %v1019_v47 = vld [vmem:[#allocation2] sm:$0xff] }
  0x7e   : > { %1661 = vst.msk [vmem:[%s1989_s4 + $0x270] sm:$0xff] %vm302_vm0, %v967_v50  ;;  %v969_v5 = vadd.f32 %v1957_v2, %v937_v36  ;;  %v939_v28 = vadd.f32 %v907_v52, %v836_v26  ;;  %v909_v54 = vmul.f32 %v2421_v46, %v2089_v0  ;;  %v839_v3 = vmul.f32 %v1940_v59, %v2087_v63  ;;  %v2658_v52 = vld [vmem:[%s2961_s1 + $0x2] ss:$0 sm:$0xff] }
  0x7f   : > { %1662 = vst.msk [vmem:[%s1989_s4 + $0x278] sm:$0xff] %vm302_vm0, %v968_v27  ;;  %v970_v11 = vadd.f32 %v1957_v2, %v938_v10  ;;  %v940_v51 = vadd.f32 %v908_v53, %v837_v57  ;;  %v910_v62 = vmul.f32 %v2421_v46, %v2098_v6  ;;  %v840_v33 = vmul.f32 %v1940_v59, %v2089_v0  ;;  %v2663_v57 = vld [vmem:[%s2961_s1 + $0x8] ss:$0 sm:$0xff]  ;;  %v1189_v27 = vld [vmem:[#allocation2 + $0x10] sm:$0xff] }
  0x80   : > { %1663 = vst.msk [vmem:[%s1989_s4 + $0x280] sm:$0xff] %vm302_vm0, %v969_v5  ;;  %v971_v14 = vadd.f32 %v1957_v2, %v939_v28  ;;  %v941_v56 = vadd.f32 %v909_v54, %v838_v45  ;;  %v911_v63 = vmul.f32 %v2421_v46, %v2113_v16  ;;  %v841_v12 = vmul.f32 %v1940_v59, %v2098_v6  ;;  %v2675_v5 = vld [vmem:[%s2961_s1 + $0xa] ss:$0 sm:$0xff] }
  0x81   : > { %1664 = vst.msk [vmem:[%s1989_s4 + $0x288] sm:$0xff] %vm302_vm0, %v970_v11  ;;  %v972_v34 = vadd.f32 %v1957_v2, %v940_v51  ;;  %v942_v31 = vadd.f32 %v910_v62, %v839_v3  ;;  %v912_v0 = vmul.f32 %v2421_v46, %v2128_v25  ;;  %v842_v15 = vmul.f32 %v1940_v59, %v2113_v16  ;;  %v1020_v28 = vld [vmem:[#allocation2 + $0x8] sm:$0xff]  ;;  %v1190_v62 = vld [vmem:[#allocation2 + $0x18] sm:$0xff] }
  0x82   : > { %1665 = vst.msk [vmem:[%s1989_s4 + $0x290] sm:$0xff] %vm302_vm0, %v971_v14  ;;  %v973_v4 = vadd.f32 %v1957_v2, %v941_v56  ;;  %v943_v35 = vadd.f32 %v911_v63, %v840_v33  ;;  %v913_v6 = vmul.f32 %v2421_v46, %v2130_v29  ;;  %v843_v18 = vmul.f32 %v1940_v59, %v2128_v25 }
  0x83   : > { %1666 = vst.msk [vmem:[%s1989_s4 + $0x298] sm:$0xff] %vm302_vm0, %v972_v34  ;;  %v974_v13 = vadd.f32 %v1957_v2, %v942_v31  ;;  %v944_v55 = vadd.f32 %v912_v0, %v841_v12  ;;  %v914_v16 = vmul.f32 %v2421_v46, %v2132_v30  ;;  %v844_v40 = vmul.f32 %v1940_v59, %v2130_v29  ;;  %v1191_v34 = vld [vmem:[#allocation2 + $0x20] sm:$0xff] }
  0x84   : > { %1667 = vst.msk [vmem:[%s1989_s4 + $0x2a0] sm:$0xff] %vm302_vm0, %v973_v4  ;;  %v975_v17 = vadd.f32 %v1957_v2, %v943_v35  ;;  %v945_v19 = vadd.f32 %v913_v6, %v842_v15  ;;  %v915_v25 = vmul.f32 %v2421_v46, %v2141_v38  ;;  %v845_v22 = vmul.f32 %v1940_v59, %v2132_v30  ;;  %v1192_v4 = vld [vmem:[#allocation2 + $0x28] sm:$0xff]  ;;  %v2706_v35 = vld [vmem:[%s2962_s2] ss:$0 sm:$0xff] }
  0x85   : > { %1668 = vst.msk [vmem:[%s1989_s4 + $0x2a8] sm:$0xff] %vm302_vm0, %v974_v13  ;;  %v976_v41 = vadd.f32 %v1957_v2, %v944_v55  ;;  %v946_v32 = vadd.f32 %v914_v16, %v843_v18  ;;  %v916_v29 = vmul.f32 %v2421_v46, %v2143_v39  ;;  %v846_v21 = vmul.f32 %v1940_v59, %v2141_v38  ;;  %v2646_v38 = vld [vmem:[%s2961_s1] ss:$0 sm:$0xff] }
  0x86   : > { %1669 = vst.msk [vmem:[%s1989_s4 + $0x2b0] sm:$0xff] %vm302_vm0, %v975_v17  ;;  %v977_v42 = vadd.f32 %v1957_v2, %v945_v19  ;;  %v947_v44 = vadd.f32 %v915_v25, %v844_v40  ;;  %v917_v30 = vmul.f32 %v2421_v46, %v2145_v43  ;;  %v847_v58 = vmul.f32 %v1940_v59, %v2143_v39  ;;  %v1193_v17 = vld [vmem:[#allocation2 + $0x30] sm:$0xff] }
  0x87   : > { %1670 = vst.msk [vmem:[%s1989_s4 + $0x2b8] sm:$0xff] %vm302_vm0, %v976_v41  ;;  %v978_v26 = vadd.f32 %v1957_v2, %v946_v32  ;;  %v948_v50 = vadd.f32 %v916_v29, %v845_v22  ;;  %v918_v36 = vmul.f32 %v2421_v46, %v2154_v49  ;;  %v848_v39 = vmul.f32 %v1940_v59, %v2145_v43 }
  0x88   : > { %1671 = vst.msk [vmem:[%s1989_s4 + $0x2c0] sm:$0xff] %vm302_vm0, %v977_v42  ;;  %v979_v10 = vadd.f32 %v1957_v2, %v947_v44  ;;  %v949_v53 = vadd.f32 %v917_v30, %v846_v21  ;;  %v919_v43 = vmul.f32 %v2421_v46, %v2632_v20  ;;  %v849_v45 = vmul.f32 %v1940_v59, %v2154_v49 }
  0x89   : > { %1672 = vst.msk [vmem:[%s1989_s4 + $0x2c8] sm:$0xff] %vm302_vm0, %v978_v26  ;;  %v980_v54 = vadd.f32 %v1957_v2, %v948_v50  ;;  %v950_v3 = vadd.f32 %v918_v36, %v847_v58  ;;  %v920_v11 = vmul.f32 %v2421_v46, %v2641_v60  ;;  %v1055_v51 = vmul.f32 %v2646_v38, %v1019_v47  ;;  %v1194_v47 = vld [vmem:[#allocation2 + $0x38] sm:$0xff] }
  0x8a   : > { %1673 = vst.msk [vmem:[%s1989_s4 + $0x2d0] sm:$0xff] %vm302_vm0, %v979_v10  ;;  %v981_v59 = vadd.f32 %v1957_v2, %v949_v53  ;;  %v951_v49 = vadd.f32 %v919_v43, %v848_v39  ;;  %v1124_v33 = vmul.f32 %v2658_v52, %v2174_v61  ;;  %v1225_v14 = vmul.f32 %v2663_v57, %v1189_v27  ;;  %v1195_v43 = vld [vmem:[#allocation2 + $0x40] sm:$0xff] }
  0x8b   : > { %1674 = vst.msk [vmem:[%s1989_s4 + $0x2d8] sm:$0xff] %vm302_vm0, %v980_v54  ;;  %v982_v56 = vadd.f32 %v1957_v2, %v950_v3  ;;  %v952_v63 = vadd.f32 %v920_v11, %v849_v45  ;;  %v1327_v46 = vmul.f32 %v2675_v5, %v2191_v8  ;;  %v1056_v12 = vmul.f32 %v2646_v38, %v1020_v28 }
  0x8c   : > { %1675 = vst.msk [vmem:[%s1989_s4 + $0x2e0] sm:$0xff] %vm302_vm0, %v981_v59  ;;  %v983_v31 = vadd.f32 %v1957_v2, %v951_v49  ;;  %v1156_v0 = vadd.f32 %v1124_v33, %v1055_v51  ;;  %v1125_v61 = vmul.f32 %v2658_v52, %v2189_v7  ;;  %v1226_v15 = vmul.f32 %v2663_v57, %v1190_v62  ;;  %v1196_v59 = vld [vmem:[#allocation2 + $0x48] sm:$0xff] }
  0x8d   : > { %1676 = vst.msk [vmem:[%s1989_s4 + $0x2e8] sm:$0xff] %vm302_vm0, %v982_v56  ;;  %v984_v6 = vadd.f32 %v2706_v35, %v952_v63  ;;  %v1328_v2 = vmul.f32 %v2675_v5, %v2200_v23  ;;  %v1057_v18 = vmul.f32 %v2646_v38, %v1189_v27  ;;  %v1126_v7 = vmul.f32 %v2658_v52, %v2191_v8 }
  0x8e   : > { %1677 = vst.msk [vmem:[%s1989_s4 + $0x2f0] sm:$0xff] %vm302_vm0, %v983_v31  ;;  %v1257_v13 = vadd.f32 %v1225_v14, %v1156_v0  ;;  %v1157_v55 = vadd.f32 %v1125_v61, %v1056_v12  ;;  %v1227_v16 = vmul.f32 %v2663_v57, %v1191_v34  ;;  %v1329_v40 = vmul.f32 %v2675_v5, %v2209_v37  ;;  %v2975_v0 = vld [vmem:[#allocation3_spill] sm:$0xff] }
  0x8f   : > { %1678 = vst.msk [vmem:[%s1989_s4 + $0x2f8] sm:$0xff] %vm302_vm0, %v984_v6  ;;  %v1158_v19 = vadd.f32 %v1126_v7, %v1057_v18  ;;  %v1058_v25 = vmul.f32 %v2646_v38, %v1190_v62  ;;  %v1127_v22 = vmul.f32 %v2658_v52, %v2200_v23  ;;  %v1228_v8 = vmul.f32 %v2663_v57, %v1192_v4 }
  0x90   : > { %v1359_v41 = vadd.f32 %v1327_v46, %v1257_v13  ;;  %v1258_v32 = vadd.f32 %v1226_v15, %v1157_v55  ;;  %v1330_v29 = vmul.f32 %v2675_v5, %v2224_v48  ;;  %v1059_v21 = vmul.f32 %v2646_v38, %v1191_v34  ;;  %v1197_v34 = vld [vmem:[#allocation2 + $0x50] sm:$0xff]  ;;  %v2976_v55 = vld [vmem:[#allocation4_spill] sm:$0xff] }
  0x91   : > { %v1259_v42 = vadd.f32 %v1227_v16, %v1158_v19  ;;  %v1159_v44 = vadd.f32 %v1127_v22, %v1058_v25  ;;  %v1128_v30 = vmul.f32 %v2658_v52, %v2209_v37  ;;  %v1229_v58 = vmul.f32 %v2663_v57, %v1193_v17 }
  0x92   : > { %v1391_v23 = vadd.f32 %v2706_v35, %v1359_v41  ;;  %v1360_v26 = vadd.f32 %v1328_v2, %v1258_v32  ;;  %v1331_v50 = vmul.f32 %v2675_v5, %v2239_v1  ;;  %v1060_v36 = vmul.f32 %v2646_v38, %v1192_v4 }
  0x93   : > { %v1361_v39 = vadd.f32 %v1329_v40, %v1259_v42  ;;  %v1260_v27 = vadd.f32 %v1228_v8, %v1159_v44  ;;  %v1160_v10 = vadd.f32 %v1128_v30, %v1059_v21  ;;  %v1129_v53 = vmul.f32 %v2658_v52, %v2224_v48  ;;  %v1199_v8 = vld [vmem:[#allocation2 + $0x60] sm:$0xff] }
  0x94   : > { %1685 = vst.msk [vmem:[%s1989_s4 + $0x300] sm:$0xff] %vm302_vm0, %v1391_v23  ;;  %v1392_v37 = vadd.f32 %v2706_v35, %v1360_v26  ;;  %v1230_v45 = vmul.f32 %v2663_v57, %v1194_v47  ;;  %v1332_v28 = vmul.f32 %v2675_v5, %v2248_v9  ;;  %v1061_v54 = vmul.f32 %v2646_v38, %v1193_v17  ;;  %v1098_v17 = vld [vmem:[#allocation2 + $0x160] sm:$0xff]  ;;  %v1099_v23 = vld [vmem:[#allocation2 + $0x168] sm:$0xff] }
  0x95   : > { %v1393_v3 = vadd.f32 %v2706_v35, %v1361_v39  ;;  %v1362_v11 = vadd.f32 %v1330_v29, %v1260_v27  ;;  %v1261_v51 = vadd.f32 %v1229_v58, %v1160_v10  ;;  %v1161_v62 = vadd.f32 %v1129_v53, %v1060_v36  ;;  %v2977_v29 = vld [vmem:[#allocation5_spill] sm:$0xff]  ;;  %v1200_v26 = vld [vmem:[#allocation2 + $0x68] sm:$0xff]  ;;  %v2978_v39 = vld [vmem:[#allocation6_spill] sm:$0xff] }
  0x96   : > { %1686 = vst.msk [vmem:[%s1989_s4 + $0x308] sm:$0xff] %vm302_vm0, %v1392_v37  ;;  %v1130_v48 = vmul.f32 %v2658_v52, %v2239_v1  ;;  %v1231_v49 = vmul.f32 %v2663_v57, %v1195_v43  ;;  %v1333_v33 = vmul.f32 %v2675_v5, %v2255_v24  ;;  %v1062_v14 = vmul.f32 %v2646_v38, %v1194_v47  ;;  %v1100_v53 = vld [vmem:[#allocation2 + $0x170] sm:$0xff] }
  0x97   : > { %1687 = vst.msk [vmem:[%s1989_s4 + $0x310] sm:$0xff] %vm302_vm0, %v1393_v3  ;;  %v1394_v56 = vadd.f32 %v2706_v35, %v1362_v11  ;;  %v1363_v63 = vadd.f32 %v1331_v50, %v1261_v51  ;;  %v1262_v46 = vadd.f32 %v1230_v45, %v1161_v62  ;;  %v1131_v12 = vmul.f32 %v2658_v52, %v2248_v9  ;;  %v1198_v9 = vld [vmem:[#allocation2 + $0x58] sm:$0xff]  ;;  %v1303_v3 = vld [vmem:[#allocation2 + $0x180] sm:$0xff] }
  0x98   : > { %v1162_v31 = vadd.f32 %v1130_v48, %v1061_v54  ;;  %v1232_v1 = vmul.f32 %v2663_v57, %v1196_v59  ;;  %v1334_v61 = vmul.f32 %v2675_v5, %v2975_v0  ;;  %v1063_v15 = vmul.f32 %v2646_v38, %v1195_v43  ;;  %v1201_v54 = vld [vmem:[#allocation2 + $0x70] sm:$0xff]  ;;  %v2979_v62 = vld [vmem:[#allocation7_spill] sm:$0xff] }
  0x99   : > { %1688 = vst.msk [vmem:[%s1989_s4 + $0x318] sm:$0xff] %vm302_vm0, %v1394_v56  ;;  %v1395_v4 = vadd.f32 %v2706_v35, %v1363_v63  ;;  %v1364_v6 = vadd.f32 %v1332_v28, %v1262_v46  ;;  %v1163_v2 = vadd.f32 %v1131_v12, %v1062_v14  ;;  %v1132_v18 = vmul.f32 %v2658_v52, %v2255_v24  ;;  %v1202_v46 = vld [vmem:[#allocation2 + $0x78] sm:$0xff]  ;;  %v1304_v12 = vld [vmem:[#allocation2 + $0x188] sm:$0xff] }
  0x9a   : > { %v1263_v7 = vadd.f32 %v1231_v49, %v1162_v31  ;;  %v1233_v13 = vmul.f32 %v2663_v57, %v1197_v34  ;;  %v1335_v16 = vmul.f32 %v2675_v5, %v2976_v55  ;;  %v1064_v40 = vmul.f32 %v2646_v38, %v1196_v59  ;;  %v1101_v49 = vld [vmem:[#allocation2 + $0x178] sm:$0xff] }
  0x9b   : > { %1689 = vst.msk [vmem:[%s1989_s4 + $0x320] sm:$0xff] %vm302_vm0, %v1395_v4  ;;  %v1396_v19 = vadd.f32 %v2706_v35, %v1364_v6  ;;  %v1264_v25 = vadd.f32 %v1232_v1, %v1163_v2  ;;  %v1164_v22 = vadd.f32 %v1132_v18, %v1063_v15  ;;  %v1133_v24 = vmul.f32 %v2658_v52, %v2975_v0  ;;  %v1203_v2 = vld [vmem:[#allocation2 + $0x80] sm:$0xff]  ;;  %v1305_v18 = vld [vmem:[#allocation2 + $0x190] sm:$0xff] }
  0x9c   : > { %v1365_v41 = vadd.f32 %v1333_v33, %v1263_v7  ;;  %v1234_v32 = vmul.f32 %v2663_v57, %v1198_v9  ;;  %v1336_v21 = vmul.f32 %v2675_v5, %v2977_v29  ;;  %v1065_v42 = vmul.f32 %v2646_v38, %v1197_v34 }
  0x9d   : > { %1690 = vst.msk [vmem:[%s1989_s4 + $0x328] sm:$0xff] %vm302_vm0, %v1396_v19  ;;  %v1366_v44 = vadd.f32 %v1334_v61, %v1264_v25  ;;  %v1265_v30 = vadd.f32 %v1233_v13, %v1164_v22  ;;  %v1165_v58 = vadd.f32 %v1133_v24, %v1064_v40  ;;  %v1134_v47 = vmul.f32 %v2658_v52, %v1098_v17  ;;  %v1204_v25 = vld [vmem:[#allocation2 + $0x88] sm:$0xff]  ;;  %v1306_v22 = vld [vmem:[#allocation2 + $0x198] sm:$0xff] }
  0x9e   : > { %v1397_v50 = vadd.f32 %v2706_v35, %v1365_v41  ;;  %v1235_v36 = vmul.f32 %v2663_v57, %v1199_v8  ;;  %v1337_v27 = vmul.f32 %v2675_v5, %v2978_v39  ;;  %v1066_v10 = vmul.f32 %v2646_v38, %v1198_v9 }
  0x9f   : > { %v1398_v43 = vadd.f32 %v2706_v35, %v1366_v44  ;;  %v1367_v37 = vadd.f32 %v1335_v16, %v1265_v30  ;;  %v1266_v45 = vadd.f32 %v1234_v32, %v1165_v58  ;;  %v1166_v28 = vadd.f32 %v1134_v47, %v1065_v42  ;;  %v1205_v30 = vld [vmem:[#allocation2 + $0x90] sm:$0xff]  ;;  %v1307_v58 = vld [vmem:[#allocation2 + $0x1a0] sm:$0xff] }
  0xa0   : > { %1691 = vst.msk [vmem:[%s1989_s4 + $0x330] sm:$0xff] %vm302_vm0, %v1397_v50  ;;  %v1135_v11 = vmul.f32 %v2658_v52, %v1099_v23  ;;  %v1236_v51 = vmul.f32 %v2663_v57, %v1200_v26  ;;  %v1338_v59 = vmul.f32 %v2675_v5, %v2979_v62  ;;  %v1067_v48 = vmul.f32 %v2646_v38, %v1199_v8 }
  0xa1   : > { %1692 = vst.msk [vmem:[%s1989_s4 + $0x338] sm:$0xff] %vm302_vm0, %v1398_v43  ;;  %v1399_v33 = vadd.f32 %v2706_v35, %v1367_v37  ;;  %v1368_v14 = vadd.f32 %v1336_v21, %v1266_v45  ;;  %v1267_v56 = vadd.f32 %v1235_v36, %v1166_v28  ;;  %v1136_v63 = vmul.f32 %v2658_v52, %v1100_v53  ;;  %v1206_v53 = vld [vmem:[#allocation2 + $0x98] sm:$0xff]  ;;  %v1308_v43 = vld [vmem:[#allocation2 + $0x1a8] sm:$0xff] }
  0xa2   : > { %v1167_v34 = vadd.f32 %v1135_v11, %v1066_v10  ;;  %v1237_v31 = vmul.f32 %v2663_v57, %v1201_v54  ;;  %v1339_v1 = vmul.f32 %v2675_v5, %v1303_v3  ;;  %v1068_v0 = vmul.f32 %v2646_v38, %v1200_v26 }
  0xa3   : > { %1693 = vst.msk [vmem:[%s1989_s4 + $0x340] sm:$0xff] %vm302_vm0, %v1399_v33  ;;  %v1400_v61 = vadd.f32 %v2706_v35, %v1368_v14  ;;  %v1369_v15 = vadd.f32 %v1337_v27, %v1267_v56  ;;  %v1168_v4 = vadd.f32 %v1136_v63, %v1067_v48  ;;  %v1137_v6 = vmul.f32 %v2658_v52, %v1101_v49  ;;  %v1309_v48 = vld [vmem:[#allocation2 + $0x1b0] sm:$0xff] }
  0xa4   : > { %v1268_v9 = vadd.f32 %v1236_v51, %v1167_v34  ;;  %v1238_v7 = vmul.f32 %v2663_v57, %v1202_v46  ;;  %v1340_v13 = vmul.f32 %v2675_v5, %v1304_v12  ;;  %v1069_v55 = vmul.f32 %v2646_v38, %v1201_v54 }
  0xa5   : > { %1694 = vst.msk [vmem:[%s1989_s4 + $0x348] sm:$0xff] %vm302_vm0, %v1400_v61  ;;  %v1401_v16 = vadd.f32 %v2706_v35, %v1369_v15  ;;  %v1269_v40 = vadd.f32 %v1237_v31, %v1168_v4  ;;  %v1169_v17 = vadd.f32 %v1137_v6, %v1068_v0  ;;  %v1138_v19 = vmul.f32 %v2658_v52, %v1303_v3  ;;  %v1208_v31 = vld [vmem:[#allocation2 + $0xa8] sm:$0xff] }
  0xa6   : > { %v1370_v24 = vadd.f32 %v1338_v59, %v1268_v9  ;;  %v1239_v8 = vmul.f32 %v2663_v57, %v1203_v2  ;;  %v1341_v41 = vmul.f32 %v2675_v5, %v1305_v18  ;;  %v1070_v32 = vmul.f32 %v2646_v38, %v1202_v46  ;;  %v1207_v59 = vld [vmem:[#allocation2 + $0xa0] sm:$0xff] }
  0xa7   : > { %1695 = vst.msk [vmem:[%s1989_s4 + $0x350] sm:$0xff] %vm302_vm0, %v1401_v16  ;;  %v1371_v29 = vadd.f32 %v1339_v1, %v1269_v40  ;;  %v1270_v21 = vadd.f32 %v1238_v7, %v1169_v17  ;;  %v1170_v42 = vadd.f32 %v1138_v19, %v1069_v55  ;;  %v1139_v44 = vmul.f32 %v2658_v52, %v1304_v12  ;;  %v1310_v1 = vld [vmem:[#allocation2 + $0x1b8] sm:$0xff]  ;;  %v1209_v7 = vld [vmem:[#allocation2 + $0xb0] sm:$0xff] }
  0xa8   : > { %v1402_v47 = vadd.f32 %v2706_v35, %v1370_v24  ;;  %v1240_v23 = vmul.f32 %v2663_v57, %v1204_v25  ;;  %v1342_v26 = vmul.f32 %v2675_v5, %v1306_v22  ;;  %v1071_v50 = vmul.f32 %v2646_v38, %v1203_v2 }
  0xa9   : > { %v1403_v36 = vadd.f32 %v2706_v35, %v1371_v29  ;;  %v1372_v39 = vadd.f32 %v1340_v13, %v1270_v21  ;;  %v1271_v27 = vadd.f32 %v1239_v8, %v1170_v42  ;;  %v1171_v10 = vadd.f32 %v1139_v44, %v1070_v32  ;;  %v1311_v13 = vld [vmem:[#allocation2 + $0x1c0] sm:$0xff]  ;;  %v1210_v8 = vld [vmem:[#allocation2 + $0xb8] sm:$0xff] }
  0xaa   : > { %1696 = vst.msk [vmem:[%s1989_s4 + $0x358] sm:$0xff] %vm302_vm0, %v1402_v47  ;;  %v1140_v37 = vmul.f32 %v2658_v52, %v1305_v18  ;;  %v1241_v45 = vmul.f32 %v2663_v57, %v1205_v30  ;;  %v1343_v28 = vmul.f32 %v2675_v5, %v1307_v58  ;;  %v1072_v54 = vmul.f32 %v2646_v38, %v1204_v25 }
  0xab   : > { %1697 = vst.msk [vmem:[%s1989_s4 + $0x360] sm:$0xff] %vm302_vm0, %v1403_v36  ;;  %v1404_v3 = vadd.f32 %v2706_v35, %v1372_v39  ;;  %v1373_v11 = vadd.f32 %v1341_v41, %v1271_v27  ;;  %v1272_v51 = vadd.f32 %v1240_v23, %v1171_v10  ;;  %v1141_v62 = vmul.f32 %v2658_v52, %v1306_v22  ;;  %v1312_v41 = vld [vmem:[#allocation2 + $0x1c8] sm:$0xff]  ;;  %v1211_v23 = vld [vmem:[#allocation2 + $0xc0] sm:$0xff] }
  0xac   : > { %v1172_v49 = vadd.f32 %v1140_v37, %v1071_v50  ;;  %v1242_v33 = vmul.f32 %v2663_v57, %v1206_v53  ;;  %v1344_v14 = vmul.f32 %v2675_v5, %v1308_v43  ;;  %v1073_v56 = vmul.f32 %v2646_v38, %v1205_v30 }
  0xad   : > { %1698 = vst.msk [vmem:[%s1989_s4 + $0x368] sm:$0xff] %vm302_vm0, %v1404_v3  ;;  %v1405_v63 = vadd.f32 %v2706_v35, %v1373_v11  ;;  %v1374_v46 = vadd.f32 %v1342_v26, %v1272_v51  ;;  %v1173_v12 = vadd.f32 %v1141_v62, %v1072_v54  ;;  %v1142_v34 = vmul.f32 %v2658_v52, %v1307_v58  ;;  %v1313_v26 = vld [vmem:[#allocation2 + $0x1d0] sm:$0xff] }
  0xae   : > { %v1273_v0 = vadd.f32 %v1241_v45, %v1172_v49  ;;  %v1243_v61 = vmul.f32 %v2663_v57, %v1207_v59  ;;  %v1345_v15 = vmul.f32 %v2675_v5, %v1309_v48  ;;  %v1074_v4 = vmul.f32 %v2646_v38, %v1206_v53  ;;  %v1212_v45 = vld [vmem:[#allocation2 + $0xc8] sm:$0xff] }
  0xaf   : > { %1699 = vst.msk [vmem:[%s1989_s4 + $0x370] sm:$0xff] %vm302_vm0, %v1405_v63  ;;  %v1406_v6 = vadd.f32 %v2706_v35, %v1374_v46  ;;  %v1274_v2 = vadd.f32 %v1242_v33, %v1173_v12  ;;  %v1174_v18 = vadd.f32 %v1142_v34, %v1073_v56  ;;  %v1143_v9 = vmul.f32 %v2658_v52, %v1308_v43  ;;  %v1213_v33 = vld [vmem:[#allocation2 + $0xd0] sm:$0xff] }
  0xb0   : > { %v1375_v55 = vadd.f32 %v1343_v28, %v1273_v0  ;;  %v1244_v16 = vmul.f32 %v2663_v57, %v1208_v31  ;;  %v1346_v40 = vmul.f32 %v2675_v5, %v1310_v1  ;;  %v1075_v17 = vmul.f32 %v2646_v38, %v1207_v59  ;;  %v1314_v28 = vld [vmem:[#allocation2 + $0x1d8] sm:$0xff] }
  0xb1   : > { %1700 = vst.msk [vmem:[%s1989_s4 + $0x378] sm:$0xff] %vm302_vm0, %v1406_v6  ;;  %v1376_v19 = vadd.f32 %v1344_v14, %v1274_v2  ;;  %v1275_v25 = vadd.f32 %v1243_v61, %v1174_v18  ;;  %v1175_v22 = vadd.f32 %v1143_v9, %v1074_v4  ;;  %v1144_v24 = vmul.f32 %v2658_v52, %v1309_v48  ;;  %v1315_v14 = vld [vmem:[#allocation2 + $0x1e0] sm:$0xff]  ;;  %v1214_v61 = vld [vmem:[#allocation2 + $0xd8] sm:$0xff] }
  0xb2   : > { %v1407_v32 = vadd.f32 %v2706_v35, %v1375_v55  ;;  %v1245_v29 = vmul.f32 %v2663_v57, %v1209_v7  ;;  %v1347_v21 = vmul.f32 %v2675_v5, %v1311_v13  ;;  %v1076_v42 = vmul.f32 %v2646_v38, %v1208_v31 }
  0xb3   : > { %v1408_v44 = vadd.f32 %v2706_v35, %v1376_v19  ;;  %v1377_v30 = vadd.f32 %v1345_v15, %v1275_v25  ;;  %v1276_v58 = vadd.f32 %v1244_v16, %v1175_v22  ;;  %v1176_v47 = vadd.f32 %v1144_v24, %v1075_v17  ;;  %v1316_v15 = vld [vmem:[#allocation2 + $0x1e8] sm:$0xff]  ;;  %v1215_v16 = vld [vmem:[#allocation2 + $0xe0] sm:$0xff] }
  0xb4   : > { %1701 = vst.msk [vmem:[%s1989_s4 + $0x380] sm:$0xff] %vm302_vm0, %v1407_v32  ;;  %v1145_v50 = vmul.f32 %v2658_v52, %v1310_v1  ;;  %v1246_v36 = vmul.f32 %v2663_v57, %v1210_v8  ;;  %v1348_v39 = vmul.f32 %v2675_v5, %v1312_v41  ;;  %v1077_v27 = vmul.f32 %v2646_v38, %v1209_v7 }
  0xb5   : > { %1702 = vst.msk [vmem:[%s1989_s4 + $0x388] sm:$0xff] %vm302_vm0, %v1408_v44  ;;  %v1409_v10 = vadd.f32 %v2706_v35, %v1377_v30  ;;  %v1378_v53 = vadd.f32 %v1346_v40, %v1276_v58  ;;  %v1277_v43 = vadd.f32 %v1245_v29, %v1176_v47  ;;  %v1146_v37 = vmul.f32 %v2658_v52, %v1311_v13  ;;  %v1317_v40 = vld [vmem:[#allocation2 + $0x1f0] sm:$0xff]  ;;  %v1216_v29 = vld [vmem:[#allocation2 + $0xe8] sm:$0xff] }
  0xb6   : > { %v1177_v54 = vadd.f32 %v1145_v50, %v1076_v42  ;;  %v1247_v3 = vmul.f32 %v2663_v57, %v1211_v23  ;;  %v1349_v11 = vmul.f32 %v2675_v5, %v1313_v26  ;;  %v1078_v51 = vmul.f32 %v2646_v38, %v1210_v8 }
  0xb7   : > { %1703 = vst.msk [vmem:[%s1989_s4 + $0x390] sm:$0xff] %vm302_vm0, %v1409_v10  ;;  %v1410_v62 = vadd.f32 %v2706_v35, %v1378_v53  ;;  %v1379_v59 = vadd.f32 %v1347_v21, %v1277_v43  ;;  %v1178_v48 = vadd.f32 %v1146_v37, %v1077_v27  ;;  %v1147_v49 = vmul.f32 %v2658_v52, %v1312_v41  ;;  %v1318_v21 = vld [vmem:[#allocation2 + $0x1f8] sm:$0xff] }
  0xb8   : > { %v1278_v56 = vadd.f32 %v1246_v36, %v1177_v54  ;;  %v1248_v63 = vmul.f32 %v2663_v57, %v1212_v45  ;;  %v1350_v46 = vmul.f32 %v2675_v5, %v1314_v28  ;;  %v1079_v12 = vmul.f32 %v2646_v38, %v1211_v23  ;;  %v1217_v36 = vld [vmem:[#allocation2 + $0xf0] sm:$0xff] }
  0xb9   : > { %1704 = vst.msk [vmem:[%s1989_s4 + $0x398] sm:$0xff] %vm302_vm0, %v1410_v62  ;;  %v1411_v34 = vadd.f32 %v2706_v35, %v1379_v59  ;;  %v1279_v31 = vadd.f32 %v1247_v3, %v1178_v48  ;;  %v1179_v1 = vadd.f32 %v1147_v49, %v1078_v51  ;;  %v1148_v0 = vmul.f32 %v2658_v52, %v1313_v26  ;;  %v1218_v3 = vld [vmem:[#allocation2 + $0xf8] sm:$0xff] }
  0xba   : > { %v1380_v4 = vadd.f32 %v1348_v39, %v1278_v56  ;;  %v1249_v6 = vmul.f32 %v2663_v57, %v1213_v33  ;;  %v1351_v2 = vmul.f32 %v2675_v5, %v1315_v14  ;;  %v1080_v18 = vmul.f32 %v2646_v38, %v1212_v45  ;;  %v1319_v39 = vld [vmem:[#allocation2 + $0x200] sm:$0xff] }
  0xbb   : > { %1705 = vst.msk [vmem:[%s1989_s4 + $0x3a0] sm:$0xff] %vm302_vm0, %v1411_v34  ;;  %v1381_v9 = vadd.f32 %v1349_v11, %v1279_v31  ;;  %v1280_v7 = vadd.f32 %v1248_v63, %v1179_v1  ;;  %v1180_v13 = vadd.f32 %v1148_v0, %v1079_v12  ;;  %v1149_v55 = vmul.f32 %v2658_v52, %v1314_v28  ;;  %v1320_v11 = vld [vmem:[#allocation2 + $0x208] sm:$0xff]  ;;  %v1321_v63 = vld [vmem:[#allocation2 + $0x210] sm:$0xff] }
  0xbc   : > { %v1412_v17 = vadd.f32 %v2706_v35, %v1380_v4  ;;  %v1250_v19 = vmul.f32 %v2663_v57, %v1214_v61  ;;  %v1352_v25 = vmul.f32 %v2675_v5, %v1316_v15  ;;  %v1081_v22 = vmul.f32 %v2646_v38, %v1213_v33 }
  0xbd   : > { %v1413_v24 = vadd.f32 %v2706_v35, %v1381_v9  ;;  %v1382_v8 = vadd.f32 %v1350_v46, %v1280_v7  ;;  %v1281_v41 = vadd.f32 %v1249_v6, %v1180_v13  ;;  %v1181_v32 = vadd.f32 %v1149_v55, %v1080_v18 }
  0xbe   : > { %1706 = vst.msk [vmem:[%s1989_s4 + $0x3a8] sm:$0xff] %vm302_vm0, %v1412_v17  ;;  %v1150_v42 = vmul.f32 %v2658_v52, %v1315_v14  ;;  %v1251_v44 = vmul.f32 %v2663_v57, %v1215_v16  ;;  %v1353_v30 = vmul.f32 %v2675_v5, %v1317_v40  ;;  %v1082_v58 = vmul.f32 %v2646_v38, %v1214_v61 }
  0xbf   : > { %1707 = vst.msk [vmem:[%s1989_s4 + $0x3b0] sm:$0xff] %vm302_vm0, %v1413_v24  ;;  %v1414_v47 = vadd.f32 %v2706_v35, %v1382_v8  ;;  %v1383_v23 = vadd.f32 %v1351_v2, %v1281_v41  ;;  %v1282_v26 = vadd.f32 %v1250_v19, %v1181_v32  ;;  %v1151_v50 = vmul.f32 %v2658_v52, %v1316_v15 }
  0xc0   : > { %v1182_v27 = vadd.f32 %v1150_v42, %v1081_v22  ;;  %v1252_v10 = vmul.f32 %v2663_v57, %v1216_v29  ;;  %v1354_v53 = vmul.f32 %v2675_v5, %v1318_v21  ;;  %v1083_v43 = vmul.f32 %v2646_v38, %v1215_v16  ;;  %v1322_v16 = vld [vmem:[#allocation2 + $0x218] sm:$0xff] }
  0xc1   : > { %1708 = vst.msk [vmem:[%s1989_s4 + $0x3b8] sm:$0xff] %vm302_vm0, %v1414_v47  ;;  %v1415_v37 = vadd.f32 %v2706_v35, %v1383_v23  ;;  %v1384_v45 = vadd.f32 %v1352_v25, %v1282_v26  ;;  %v1183_v28 = vadd.f32 %v1151_v50, %v1082_v58  ;;  %v1152_v54 = vmul.f32 %v2658_v52, %v1317_v40 }
  0xc2   : > { %v1283_v51 = vadd.f32 %v1251_v44, %v1182_v27  ;;  %v1253_v62 = vmul.f32 %v2663_v57, %v1217_v36  ;;  %v1355_v59 = vmul.f32 %v2675_v5, %v1319_v39  ;;  %v1084_v48 = vmul.f32 %v2646_v38, %v1216_v29 }
  0xc3   : > { %1709 = vst.msk [vmem:[%s1989_s4 + $0x3c0] sm:$0xff] %vm302_vm0, %v1415_v37  ;;  %v1416_v49 = vadd.f32 %v2706_v35, %v1384_v45  ;;  %v1284_v33 = vadd.f32 %v1252_v10, %v1183_v28  ;;  %v1184_v14 = vadd.f32 %v1152_v54, %v1083_v43  ;;  %v1153_v56 = vmul.f32 %v2658_v52, %v1318_v21 }
  0xc4   : > { %v1385_v46 = vadd.f32 %v1353_v30, %v1283_v51  ;;  %v1254_v12 = vmul.f32 %v2663_v57, %v1218_v3  ;;  %v1356_v34 = vmul.f32 %v2675_v5, %v1320_v11  ;;  %v1085_v31 = vmul.f32 %v2646_v38, %v1217_v36 }
  0xc5   : > { %1710 = vst.msk [vmem:[%s1989_s4 + $0x3c8] sm:$0xff] %vm302_vm0, %v1416_v49  ;;  %v1386_v1 = vadd.f32 %v1354_v53, %v1284_v33  ;;  %v1285_v0 = vadd.f32 %v1253_v62, %v1184_v14  ;;  %v1185_v61 = vadd.f32 %v1153_v56, %v1084_v48  ;;  %v1154_v15 = vmul.f32 %v2658_v52, %v1319_v39 }
  0xc6   : > { %v1417_v4 = vadd.f32 %v2706_v35, %v1385_v46  ;;  %v1255_v6 = vmul.f32 %v2663_v57, %v2632_v20  ;;  %v1357_v2 = vmul.f32 %v2675_v5, %v1321_v63  ;;  %v1086_v18 = vmul.f32 %v2646_v38, %v1218_v3 }
  0xc7   : > { %v1418_v9 = vadd.f32 %v2706_v35, %v1386_v1  ;;  %v1387_v7 = vadd.f32 %v1355_v59, %v1285_v0  ;;  %v1286_v13 = vadd.f32 %v1254_v12, %v1185_v61  ;;  %v1186_v55 = vadd.f32 %v1154_v15, %v1085_v31 }
  0xc8   : > { %1711 = vst.msk [vmem:[%s1989_s4 + $0x3d0] sm:$0xff] %vm302_vm0, %v1417_v4  ;;  %v1155_v40 = vmul.f32 %v2658_v52, %v1320_v11  ;;  %v1256_v20 = vmul.f32 %v2663_v57, %v2641_v60  ;;  %v1358_v22 = vmul.f32 %v2675_v5, %v1322_v16 }
  0xc9   : > { %1712 = vst.msk [vmem:[%s1989_s4 + $0x3d8] sm:$0xff] %vm302_vm0, %v1418_v9  ;;  %v1419_v38 = vadd.f32 %v2706_v35, %v1387_v7  ;;  %v1388_v17 = vadd.f32 %v1356_v34, %v1286_v13  ;;  %v1287_v19 = vadd.f32 %v1255_v6, %v1186_v55 }
  0xca   : > { %v1187_v25 = vadd.f32 %v1155_v40, %v1086_v18 }
  0xcb   : > { %1713 = vst.msk [vmem:[%s1989_s4 + $0x3e0] sm:$0xff] %vm302_vm0, %v1419_v38  ;;  %v1420_v24 = vadd.f32 %v2706_v35, %v1388_v17  ;;  %v1389_v8 = vadd.f32 %v1357_v2, %v1287_v19 }
  0xcc   : > { %v1288_v41 = vadd.f32 %v1256_v20, %v1187_v25 }
  0xcd   : > { %1714 = vst.msk [vmem:[%s1989_s4 + $0x3e8] sm:$0xff] %vm302_vm0, %v1420_v24  ;;  %v1421_v60 = vadd.f32 %v2706_v35, %v1389_v8 }
  0xce   : > { %v1390_v52 = vadd.f32 %v1358_v22, %v1288_v41 }
  0xcf   : > { %1715 = vst.msk [vmem:[%s1989_s4 + $0x3f0] sm:$0xff] %vm302_vm0, %v1421_v60 }
  0xd0   : > { %v1422_v57 = vadd.f32 %v2706_v35, %v1390_v52 }
  0xd2   : > { %1716 = vst.msk [vmem:[%s1989_s4 + $0x3f8] sm:$0xff] %vm302_vm0, %v1422_v57 }
  0xd3 PF: > { %s13_s14 = sadd.s32 1, %s1768_s14   ;;  %s2980_s12 = smov %s1764_s13 }
  0xd4   : > { %p10_p5 = scmp.ge.s32.totalorder %s13_s14, 4   ;;  %s2981_s13 = smov %s2983_s15 }
  0xd6   :  { %12 = sbr.rel (!%p10_p5) target bundleno = 2 (0x2), region = 76 }

</bundles_post_ra>
